<compile_context>
chip_gen: v6e
topology: v6e:2x2x1
jax: 0.10.0
libtpu: 0.0.40
codegen_flags: <defaults>
</compile_context>

<pallas_src>
import functools

import jax
import jax.numpy as jnp
from jax.experimental import pallas as pl
from jax.experimental.pallas import tpu as pltpu

STATE_DIM = 18
HIDDEN_DIM = 128
NUM_AGENT = 3
IN_ROWS = STATE_DIM + NUM_AGENT      # activation slab: states rows [0:18], qs rows [18:21]
FUSED_HIDDEN = 2 * HIDDEN_DIM        # hyper_w1 hidden ++ hyper_b1 hidden
FUSED_OUT = NUM_AGENT + 1            # [w_out (3) | bias (1)]


def _softplus(x):
    # torch.nn.Softplus(beta=1, threshold=20): x if x > 20 else log(1 + exp(x))
    xc = jnp.minimum(x, 20.0)
    return jnp.where(x > 20.0, x, jnp.log1p(jnp.exp(xc)))


def qmix_kernel(
    x_ref,       # (IN_ROWS, TB)      bf16  states rows 0:18, qs rows 18:21, batch on lanes
    w1_ref,      # (FUSED_HIDDEN, IN_ROWS) bf16  fused stage-1 weight (qs columns zero)
    b1_ref,      # (FUSED_HIDDEN, 1)  f32   fused stage-1 bias
    w2_ref,      # (FUSED_HIDDEN, FUSED_OUT) f32 block-diagonal stage-2 weight
    b2_ref,      # (FUSED_OUT,)       f32   stage-2 bias, SMEM
    out_ref,     # (1, TB)            f32   lane-dense output
):
    x = x_ref[...]                                            # (21, TB) bf16

    # Stage 1 (MXU): one fused (2H x 21) @ (21 x TB) bf16 matmul, f32 accumulate.
    h = jnp.dot(w1_ref[...], x, preferred_element_type=jnp.float32)
    h = jnp.maximum(h + b1_ref[...], 0.0)                     # (2H, TB) f32

    # qs rows for the final weighted sum (elementwise math stays f32).
    qs = x[STATE_DIM:IN_ROWS, :].astype(jnp.float32)          # (3, TB)

    # Stage 2 (VPU + XLU): only 4 useful outputs of a 256-row contraction, so a
    # per-column broadcast-multiply + sublane reduction beats streaming the MXU.
    #   z_a = sum_k w2[k, a] * h[k, :] + b2[a]
    def stage2(col):
        wa = w2_ref[:, col:col + 1]                           # (2H, 1) f32
        return jnp.sum(h * wa, axis=0, keepdims=True) + b2_ref[col]

    acc = stage2(NUM_AGENT)                                   # bias row, (1, TB)
    for a in range(NUM_AGENT):
        acc = acc + _softplus(stage2(a)) * qs[a:a + 1, :]
    out_ref[...] = acc


@functools.partial(jax.jit, static_argnames=("tile_b",))
def qmix_forward(qs, states, packed_params, *, tile_b=4096):
    """qs: (B, NUM_AGENT), states: (B, STATE_DIM) -> (B, 1)."""
    assert tile_b % 128 == 0, "tile_b must be a multiple of 128 (lane tiling)"
    B = qs.shape[0]
    w1p, b1p, w2p, b2p = packed_params

    num_tiles = -(-B // tile_b)                  # ceil(B / tile_b)
    b_pad = num_tiles * tile_b

    # One fused wrapper pass: concat + pad + transpose + bf16 cast (batch -> lanes).
    x = jnp.concatenate([states, qs], axis=1)    # (B, 21)
    if b_pad != B:
        x = jnp.pad(x, ((0, b_pad - B), (0, 0)))
    x_t = x.T.astype(jnp.bfloat16)               # (21, b_pad)

    cost = pl.CostEstimate(
        flops=2 * b_pad * FUSED_HIDDEN * (IN_ROWS + FUSED_OUT) + 16 * b_pad,
        transcendentals=2 * b_pad * NUM_AGENT,
        bytes_accessed=2 * b_pad * IN_ROWS + 4 * b_pad
        + 2 * w1p.size + 4 * (b1p.size + w2p.size + b2p.size),
    )

    out = pl.pallas_call(
        qmix_kernel,
        out_shape=jax.ShapeDtypeStruct((1, b_pad), jnp.float32),
        grid_spec=pltpu.PrefetchScalarGridSpec(
            num_scalar_prefetch=0,
            grid=(num_tiles,),
            in_specs=[
                pl.BlockSpec((IN_ROWS, tile_b), lambda i: (0, i)),
                pl.BlockSpec((FUSED_HIDDEN, IN_ROWS), lambda i: (0, 0)),
                pl.BlockSpec((FUSED_HIDDEN, 1), lambda i: (0, 0)),
                pl.BlockSpec((FUSED_HIDDEN, FUSED_OUT), lambda i: (0, 0)),
                pl.BlockSpec(memory_space=pltpu.MemorySpace.SMEM),
            ],
            out_specs=pl.BlockSpec((1, tile_b), lambda i: (0, i)),
        ),
        compiler_params=pltpu.CompilerParams(
            dimension_semantics=("parallel",),
        ),
        cost_estimate=cost,
    )(x_t, w1p, b1p, w2p, b2p)

    return out[0, :B][:, None]                   # back to (B, 1)


def init_params(key):
    """Torch-style Linear params: weight stored (in, out), bias (1, out)."""
    ks = jax.random.split(key, 8)

    def lin(kw, kb, fan_in, fan_out):
        bound = 1.0 / jnp.sqrt(fan_in)
        w = jax.random.uniform(kw, (fan_in, fan_out), jnp.float32, -bound, bound)
        b = jax.random.uniform(kb, (1, fan_out), jnp.float32, -bound, bound)
        return w, b

    w1_w, w1_b = lin(ks[0], ks[1], STATE_DIM, HIDDEN_DIM)
    w2_w, w2_b = lin(ks[2], ks[3], HIDDEN_DIM, NUM_AGENT)
    b1_w, b1_b = lin(ks[4], ks[5], STATE_DIM, HIDDEN_DIM)
    b2_w, b2_b = lin(ks[6], ks[7], HIDDEN_DIM, 1)
    return (w1_w, w1_b, w2_w, w2_b, b1_w, b1_b, b2_w, b2_b)


def pack_params(params):
    """Fuse the two hyper-nets: one (2H, 21) bf16 stage-1 weight (zero columns for
    the qs rows of the activation slab), one (2H, 4) f32 block-diagonal stage-2
    weight, stage-1 bias (2H, 1) f32, stage-2 bias (4,) f32."""
    (w1_w, w1_b, w2_w, w2_b, b1_w, b1_b, b2_w, b2_b) = params

    w1f = jnp.concatenate([w1_w, b1_w], axis=1).T            # (2H, 18) f32
    w1p = jnp.zeros((FUSED_HIDDEN, IN_ROWS), jnp.float32)
    w1p = w1p.at[:, :STATE_DIM].set(w1f).astype(jnp.bfloat16)

    b1p = jnp.concatenate([w1_b, b1_b], axis=1).T            # (2H, 1) f32

    w2p = jnp.zeros((FUSED_HIDDEN, FUSED_OUT), jnp.float32)
    w2p = w2p.at[:HIDDEN_DIM, :NUM_AGENT].set(w2_w)          # hyper_w1 layer 2
    w2p = w2p.at[HIDDEN_DIM:, NUM_AGENT:].set(b2_w)          # hyper_b1 layer 2

    b2p = jnp.concatenate([w2_b, b2_b], axis=1).reshape(FUSED_OUT)  # (4,) f32
    return (w1p, b1p, w2p, b2p)


def qmix_reference(qs, states, params, *, quantize=False):
    """Pure-JAX reference.  quantize=True mimics the kernel's bf16 matmul operands
    (qs/states/stage-1 weights rounded to bf16, everything else f32)."""
    (w1_w, w1_b, w2_w, w2_b, b1_w, b1_b, b2_w, b2_b) = params
    hp = jax.lax.Precision.HIGHEST
    if quantize:
        q = lambda a: a.astype(jnp.bfloat16).astype(jnp.float32)
        qs, states, w1_w, b1_w = q(qs), q(states), q(w1_w), q(b1_w)
    h_w = jnp.maximum(jnp.dot(states, w1_w, precision=hp) + w1_b, 0.0)
    weight = jax.nn.softplus(jnp.dot(h_w, w2_w, precision=hp) + w2_b)
    h_b = jnp.maximum(jnp.dot(states, b1_w, precision=hp) + b1_b, 0.0)
    bias = jnp.dot(h_b, b2_w, precision=hp) + b2_b
    return jnp.sum(weight * qs, axis=-1, keepdims=True) + bias


if __name__ == "__main__":
    key = jax.random.PRNGKey(0)
    k_p, k_q, k_s = jax.random.split(key, 3)

    params = init_params(k_p)
    packed = pack_params(params)

    # Small smoke test (batch padded up to one tile internally).
    B = 8
    qs = jax.random.normal(k_q, (B, NUM_AGENT), jnp.float32)
    states = jax.random.normal(k_s, (B, STATE_DIM), jnp.float32)
    out = jax.block_until_ready(qmix_forward(qs, states, packed, tile_b=128))
    assert out.shape == (B, 1)
    # Tight check vs. a reference with the same bf16 operand rounding.
    ref_q = qmix_reference(qs, states, params, quantize=True)
    assert jnp.allclose(out, ref_q, atol=2e-3, rtol=2e-3), (out, ref_q)
    # Loose semantic check vs. the full-f32 reference (bf16 quantization noise).
    ref = qmix_reference(qs, states, params)
    assert jnp.allclose(out, ref, atol=5e-2, rtol=5e-2), (out, ref)

    # Non-multiple batch exercising padding + multi-step parallel grid.
    B2 = 1000
    k_q2, k_s2 = jax.random.split(k_q)
    qs2 = jax.random.normal(k_q2, (B2, NUM_AGENT), jnp.float32)
    states2 = jax.random.normal(k_s2, (B2, STATE_DIM), jnp.float32)
    out2 = jax.block_until_ready(qmix_forward(qs2, states2, packed, tile_b=256))
    assert out2.shape == (B2, 1)
    ref2_q = qmix_reference(qs2, states2, params, quantize=True)
    assert jnp.allclose(out2, ref2_q, atol=2e-3, rtol=2e-3)

    print("KERNEL_OK")
</pallas_src>

<mosaic_0001>
module attributes {stable_mosaic.version = 11 : i64} {
  func.func @qmix_kernel(%arg0: i32, %arg1: memref<21x128xbf16, #tpu.memory_space<vmem>>, %arg2: memref<256x21xbf16, #tpu.memory_space<vmem>>, %arg3: memref<256x1xf32, #tpu.memory_space<vmem>>, %arg4: memref<256x4xf32, #tpu.memory_space<vmem>>, %arg5: memref<4xf32, #tpu.memory_space<smem>>, %arg6: memref<1x128xf32, #tpu.memory_space<vmem>>) attributes {dimension_semantics = [#tpu.dimension_semantics<parallel>], iteration_bounds = array<i64: 1>, scalar_prefetch = 0 : i64, scratch_operands = 0 : i64, tpu.core_type = #tpu.core_type<tc>, window_params = [{transform_indices = @transform_0, window_bounds = array<i64: 21, 128>}, {pipeline_mode = #tpu.pipeline_mode<synchronous>, transform_indices = @transform_1, window_bounds = array<i64: 256, 21>}, {pipeline_mode = #tpu.pipeline_mode<synchronous>, transform_indices = @transform_2, window_bounds = array<i64: 256, 1>}, {pipeline_mode = #tpu.pipeline_mode<synchronous>, transform_indices = @transform_3, window_bounds = array<i64: 256, 4>}, {transform_indices = @transform_4, window_bounds = array<i64: 4>}, {transform_indices = @transform_5, window_bounds = array<i64: 1, 128>}]} {
    %c0 = arith.constant 0 : index
    %c0_0 = arith.constant 0 : index
    %0 = vector.load %arg1[%c0, %c0_0] : memref<21x128xbf16, #tpu.memory_space<vmem>>, vector<21x128xbf16>
    %c0_1 = arith.constant 0 : index
    %c0_2 = arith.constant 0 : index
    %1 = vector.load %arg2[%c0_1, %c0_2] : memref<256x21xbf16, #tpu.memory_space<vmem>>, vector<256x21xbf16>
    %cst = arith.constant dense<0.000000e+00> : vector<256x128xf32>
    %2 = tpu.matmul %1, %0, %cst {dimension_numbers = #tpu.dot_dimension_numbers<[1], [0], [0], [1], [0, 0, 1, 1], [], []>} : vector<256x21xbf16>, vector<21x128xbf16>, vector<256x128xf32> -> vector<256x128xf32>
    %c0_3 = arith.constant 0 : index
    %c0_4 = arith.constant 0 : index
    %3 = vector.load %arg3[%c0_3, %c0_4] : memref<256x1xf32, #tpu.memory_space<vmem>>, vector<256x1xf32>
    %4 = vector.broadcast %3 : vector<256x1xf32> to vector<256x128xf32>
    %5 = arith.addf %2, %4 : vector<256x128xf32>
    %cst_5 = arith.constant 0.000000e+00 : f32
    %6 = vector.broadcast %cst_5 : f32 to vector<256x128xf32>
    %7 = arith.maximumf %5, %6 : vector<256x128xf32>
    %8 = vector.extract_strided_slice %0 {offsets = [18, 0], sizes = [3, 128], strides = [1, 1]} : vector<21x128xbf16> to vector<3x128xbf16>
    %9 = arith.extf %8 : vector<3x128xbf16> to vector<3x128xf32>
    %c0_6 = arith.constant 0 : index
    %c3 = arith.constant 3 : index
    %10 = vector.load %arg4[%c0_6, %c3] : memref<256x4xf32, #tpu.memory_space<vmem>>, vector<256x1xf32>
    %11 = vector.broadcast %10 : vector<256x1xf32> to vector<256x128xf32>
    %12 = arith.mulf %7, %11 : vector<256x128xf32>
    %cst_7 = arith.constant dense<0.000000e+00> : vector<128xf32>
    %13 = vector.multi_reduction <add>, %12, %cst_7 [0] : vector<256x128xf32> to vector<128xf32>
    %14 = vector.shape_cast %13 : vector<128xf32> to vector<1x128xf32>
    %c3_8 = arith.constant 3 : index
    %15 = memref.load %arg5[%c3_8] : memref<4xf32, #tpu.memory_space<smem>>
    %16 = vector.broadcast %15 : f32 to vector<1x128xf32>
    %17 = arith.addf %14, %16 : vector<1x128xf32>
    %c0_9 = arith.constant 0 : index
    %c0_10 = arith.constant 0 : index
    %18 = vector.load %arg4[%c0_9, %c0_10] : memref<256x4xf32, #tpu.memory_space<vmem>>, vector<256x1xf32>
    %19 = vector.broadcast %18 : vector<256x1xf32> to vector<256x128xf32>
    %20 = arith.mulf %7, %19 : vector<256x128xf32>
    %cst_11 = arith.constant dense<0.000000e+00> : vector<128xf32>
    %21 = vector.multi_reduction <add>, %20, %cst_11 [0] : vector<256x128xf32> to vector<128xf32>
    %22 = vector.shape_cast %21 : vector<128xf32> to vector<1x128xf32>
    %c0_12 = arith.constant 0 : index
    %23 = memref.load %arg5[%c0_12] : memref<4xf32, #tpu.memory_space<smem>>
    %24 = vector.broadcast %23 : f32 to vector<1x128xf32>
    %25 = arith.addf %22, %24 : vector<1x128xf32>
    %cst_13 = arith.constant 2.000000e+01 : f32
    %26 = vector.broadcast %cst_13 : f32 to vector<1x128xf32>
    %27 = arith.minimumf %25, %26 : vector<1x128xf32>
    %cst_14 = arith.constant 2.000000e+01 : f32
    %28 = vector.broadcast %cst_14 : f32 to vector<1x128xf32>
    %29 = arith.cmpf ogt, %25, %28 : vector<1x128xf32>
    %30 = math.exp %27 : vector<1x128xf32>
    %31 = math.log1p %30 : vector<1x128xf32>
    %32 = arith.select %29, %25, %31 : vector<1x128xi1>, vector<1x128xf32>
    %33 = vector.extract_strided_slice %9 {offsets = [0, 0], sizes = [1, 128], strides = [1, 1]} : vector<3x128xf32> to vector<1x128xf32>
    %34 = arith.mulf %32, %33 : vector<1x128xf32>
    %35 = arith.addf %17, %34 : vector<1x128xf32>
    %c0_15 = arith.constant 0 : index
    %c1 = arith.constant 1 : index
    %36 = vector.load %arg4[%c0_15, %c1] : memref<256x4xf32, #tpu.memory_space<vmem>>, vector<256x1xf32>
    %37 = vector.broadcast %36 : vector<256x1xf32> to vector<256x128xf32>
    %38 = arith.mulf %7, %37 : vector<256x128xf32>
    %cst_16 = arith.constant dense<0.000000e+00> : vector<128xf32>
    %39 = vector.multi_reduction <add>, %38, %cst_16 [0] : vector<256x128xf32> to vector<128xf32>
    %40 = vector.shape_cast %39 : vector<128xf32> to vector<1x128xf32>
    %c1_17 = arith.constant 1 : index
    %41 = memref.load %arg5[%c1_17] : memref<4xf32, #tpu.memory_space<smem>>
    %42 = vector.broadcast %41 : f32 to vector<1x128xf32>
    %43 = arith.addf %40, %42 : vector<1x128xf32>
    %cst_18 = arith.constant 2.000000e+01 : f32
    %44 = vector.broadcast %cst_18 : f32 to vector<1x128xf32>
    %45 = arith.minimumf %43, %44 : vector<1x128xf32>
    %cst_19 = arith.constant 2.000000e+01 : f32
    %46 = vector.broadcast %cst_19 : f32 to vector<1x128xf32>
    %47 = arith.cmpf ogt, %43, %46 : vector<1x128xf32>
    %48 = math.exp %45 : vector<1x128xf32>
    %49 = math.log1p %48 : vector<1x128xf32>
    %50 = arith.select %47, %43, %49 : vector<1x128xi1>, vector<1x128xf32>
    %51 = vector.extract_strided_slice %9 {offsets = [1, 0], sizes = [1, 128], strides = [1, 1]} : vector<3x128xf32> to vector<1x128xf32>
    %52 = arith.mulf %50, %51 : vector<1x128xf32>
    %53 = arith.addf %35, %52 : vector<1x128xf32>
    %c0_20 = arith.constant 0 : index
    %c2 = arith.constant 2 : index
    %54 = vector.load %arg4[%c0_20, %c2] : memref<256x4xf32, #tpu.memory_space<vmem>>, vector<256x1xf32>
    %55 = vector.broadcast %54 : vector<256x1xf32> to vector<256x128xf32>
    %56 = arith.mulf %7, %55 : vector<256x128xf32>
    %cst_21 = arith.constant dense<0.000000e+00> : vector<128xf32>
    %57 = vector.multi_reduction <add>, %56, %cst_21 [0] : vector<256x128xf32> to vector<128xf32>
    %58 = vector.shape_cast %57 : vector<128xf32> to vector<1x128xf32>
    %c2_22 = arith.constant 2 : index
    %59 = memref.load %arg5[%c2_22] : memref<4xf32, #tpu.memory_space<smem>>
    %60 = vector.broadcast %59 : f32 to vector<1x128xf32>
    %61 = arith.addf %58, %60 : vector<1x128xf32>
    %cst_23 = arith.constant 2.000000e+01 : f32
    %62 = vector.broadcast %cst_23 : f32 to vector<1x128xf32>
    %63 = arith.minimumf %61, %62 : vector<1x128xf32>
    %cst_24 = arith.constant 2.000000e+01 : f32
    %64 = vector.broadcast %cst_24 : f32 to vector<1x128xf32>
    %65 = arith.cmpf ogt, %61, %64 : vector<1x128xf32>
    %66 = math.exp %63 : vector<1x128xf32>
    %67 = math.log1p %66 : vector<1x128xf32>
    %68 = arith.select %65, %61, %67 : vector<1x128xi1>, vector<1x128xf32>
    %69 = vector.extract_strided_slice %9 {offsets = [2, 0], sizes = [1, 128], strides = [1, 1]} : vector<3x128xf32> to vector<1x128xf32>
    %70 = arith.mulf %68, %69 : vector<1x128xf32>
    %71 = arith.addf %53, %70 : vector<1x128xf32>
    %c0_25 = arith.constant 0 : index
    %c0_26 = arith.constant 0 : index
    %72 = vector.load %arg6[%c0_25, %c0_26] : memref<1x128xf32, #tpu.memory_space<vmem>>, vector<1x128xf32>
    tpu.vector_store %arg6[%c0_25, %c0_26], %71 {strides = array<i32>} : memref<1x128xf32, #tpu.memory_space<vmem>>, vector<1x128xf32>,
    return
  }
  func.func @transform_0(%arg0: i32) -> (i32, i32) {
    %c0_i32 = arith.constant 0 : i32
    %c0_i32_0 = arith.constant 0 : i32
    return %c0_i32, %arg0 : i32, i32
  }
  func.func @transform_1(%arg0: i32) -> (i32, i32) {
    %c0_i32 = arith.constant 0 : i32
    %c0_i32_0 = arith.constant 0 : i32
    %c0_i32_1 = arith.constant 0 : i32
    return %c0_i32, %c0_i32_0 : i32, i32
  }
  func.func @transform_2(%arg0: i32) -> (i32, i32) {
    %c0_i32 = arith.constant 0 : i32
    %c0_i32_0 = arith.constant 0 : i32
    %c0_i32_1 = arith.constant 0 : i32
    return %c0_i32, %c0_i32_0 : i32, i32
  }
  func.func @transform_3(%arg0: i32) -> (i32, i32) {
    %c0_i32 = arith.constant 0 : i32
    %c0_i32_0 = arith.constant 0 : i32
    %c0_i32_1 = arith.constant 0 : i32
    return %c0_i32, %c0_i32_0 : i32, i32
  }
  func.func @transform_4(%arg0: i32) -> i32 {
    %c0_i32 = arith.constant 0 : i32
    %c0_i32_0 = arith.constant 0 : i32
    return %c0_i32 : i32
  }
  func.func @transform_5(%arg0: i32) -> (i32, i32) {
    %c0_i32 = arith.constant 0 : i32
    %c0_i32_0 = arith.constant 0 : i32
    return %c0_i32, %arg0 : i32, i32
  }
}

</mosaic_0001>

<bundles_post_ra>
// kernel: qmix_forward.1
= control target key start
LH: loop header
LB: loop body
LE: loop exit
PB: predicated region body
PF: predicated region fallthrough
CT: control target
= control target key end

     0   :  { %10 = vsyncpa [#allocation3], 0  ;;  %s2576_s0 = inlined_call_operand.vmem [shape: bf16[21,128], index: 0, kind: input, shape index: {}]   ;;  %s2577_s1 = inlined_call_operand.vmem [shape: bf16[256,21], index: 1, kind: input, shape index: {}]   ;;  %s2578_s2 = inlined_call_operand.vmem [shape: f32[256,1], index: 2, kind: input, shape index: {}]   ;;  %s2579_s3 = inlined_call_operand.vmem [shape: f32[256,4], index: 3, kind: input, shape index: {}]   ;;  %s2580_s4 = inlined_call_operand.vmem [shape: f32[4], index: 4, kind: input, shape index: {}]   ;;  %s2581_s5 = inlined_call_operand.vmem [shape: f32[1,128], index: 5, kind: output, shape index: {}]  }
   0x1   :  { %s25_s20 = sshll.u32 %s2580_s4, 4  ;;  %s26_s20 = int_to_ptr.vmem [resolvable:$true] %s25_s20 }
   0x2   :  { %s1667_s21 = scalar_lea.vmem %s26_s20, 16  ;;  %p1672_p1 = scmp.lt.s32.totalorder %s26_s20, %s26_s20 }
   0x3   :  { %p1668_p0 = scmp.ne.s32.totalorder %s26_s20, %s1667_s21  ;;  %p1673_p2 = scmp.lt.s32.totalorder %s1667_s21, %s1667_s21 }
   0x5   :  { %p1674_p3 = por %p1673_p2, %p1672_p1 }
   0x7   :  { %p1675_p4 = pnand %p1674_p3, %p1668_p0 }
   0x9   :  { %1678 = shalt.err (!%p1675_p4)
}
   0xa   :  { %s1681_s22 = smov [#allocation2]  }
   0xb   :  { %28 = dma.vmem_to_smem %s26_s20, 16, %s1681_s22, [#allocation3]  }
   0xc   :  { %1679 = dma.done.wait [#allocation3], 16  }
   0xd   :  { %1680 = vsyncadd [#allocation3], 4294967280 }
   0xe   :  { %32 = sfence }
   0xf   :  { %v1723_v0 = vld [vmem:[%s2579_s3] sm:$0xff]  ;;  %v71_v1 = vld [vmem:[%s2578_s2 + $0x10] sm:$0xff]  ;;  %v36_v2 = vld [vmem:[%s2576_s0 + $0x8] sm:$0x7]  ;;  %v1682_v3 = vmov 3   ;;  %v1683_v4 = vmov 0  }
  0x10   :  { %1626 = vset.pattern.permute.xlu0 %v1682_v3  ;;  %1625 = vset.pattern.permute.xlu1 %v1683_v4  ;;  %v1541_v5 = vcombine.low %v36_v2, %v36_v2  ;;  %vm399_vm0 = vcmask 1041408   ;;  %vm400_vm1 = vcmask 1042432   ;;  %v1684_v6 = vmov 65535   ;;  %v1737_v8 = vld [vmem:[%s2579_s3 + $0x18] sm:$0xff]  ;;  %v1637_v12 = vld [vmem:[%s2576_s0] sm:$0xff]   ;;  %v1755_v15 = vld [vmem:[%s2579_s3 + $0x28] sm:$0xff] }
  0x11   :  { %634 = vperm.xlu0 %1626, %v1723_v0   ;;  %113 = vperm.xlu1 %1625, %v71_v1   ;;  %v401_v7 = vsel %vm399_vm0, 4294967295, %v1684_v6  ;;  %v72_v10 = vld [vmem:[%s2578_s2 + $0x18] sm:$0xff]  ;;  %v1638_v13 = vld [vmem:[%s2577_s1] sm:$0xff]   ;;  %vm350_vm2 = vcmask 171008   ;;  %2625 = vst [vmem:[#allocation5_spill] sm:$0xff] %v1755_v15  ;;  %v74_v16 = vld [vmem:[%s2578_s2 + $0x28] sm:$0xff] }
  0x12   :  { %v402_v9 = vsel %vm400_vm1, %v401_v7, 0  ;;  %v1639_v14 = vld [vmem:[%s2577_s1 + $0x40] sm:$0xff]   ;;  %1583 = vmatprep.mubr.msk.bf16.mxu0 %vm350_vm2, %v1638_v13  ;;  %v1640_v17 = vld [vmem:[%s2577_s1 + $0x8] sm:$0xff]   ;;  %v1772_v19 = vld [vmem:[%s2579_s3 + $0x38] sm:$0xff]  ;;  %s1560_s28 = sld [smem:[#allocation2 + $0x2]] }
  0x13   :  { %v404_v11 = vand.u32 %v1541_v5, %v402_v9  ;;  %1599 = vmatprep.mubr.msk.bf16.mxu1 %vm350_vm2, %v1639_v14  ;;  %v1641_v18 = vld [vmem:[%s2577_s1 + $0x48] sm:$0xff]   ;;  %2626 = vst [vmem:[#allocation6_spill] sm:$0xff] %v1772_v19  ;;  %v76_v20 = vld [vmem:[%s2578_s2 + $0x38] sm:$0xff]  ;;  %v1642_v21 = vld [vmem:[%s2577_s1 + $0x10] sm:$0xff]  }
  0x14   :  { %v1643_v22 = vld [vmem:[%s2577_s1 + $0x50] sm:$0xff]   ;;  %v1789_v23 = vld [vmem:[%s2579_s3 + $0x48] sm:$0xff]  ;;  %v1644_v25 = vld [vmem:[%s2577_s1 + $0x18] sm:$0xff]  }
  0x15   :  { %1579 = vmatprep.subr.bf16.mxu0 %v404_v11  ;;  %1615 = vmatprep.subr.bf16.mxu1 %v404_v11  ;;  %2627 = vst [vmem:[#allocation7_spill] sm:$0xff] %v1789_v23  ;;  %v78_v24 = vld [vmem:[%s2578_s2 + $0x48] sm:$0xff]  ;;  %v1645_v26 = vld [vmem:[%s2577_s1 + $0x58] sm:$0xff]   ;;  %v1646_v29 = vld [vmem:[%s2577_s1 + $0x20] sm:$0xff]  }
  0x16   :  { %649 = vperm.xlu0 %1626, %v1737_v8   ;;  %118 = vperm.xlu1 %1625, %v72_v10   ;;  %v1805_v27 = vld [vmem:[%s2579_s3 + $0x58] sm:$0xff]  ;;  %v1647_v30 = vld [vmem:[%s2577_s1 + $0x60] sm:$0xff]   ;;  %v1823_v31 = vld [vmem:[%s2579_s3 + $0x68] sm:$0xff] }
  0x17   :  { %1580 = vmatpush3.bf16.msra.mxu0 %v404_v11  ;;  %1617 = vmatpush3.bf16.msra.mxu1 %v404_v11  ;;  %2628 = vst [vmem:[#allocation8_spill] sm:$0xff] %v1805_v27  ;;  %v80_v28 = vld [vmem:[%s2578_s2 + $0x58] sm:$0xff]  ;;  %2629 = vst [vmem:[#allocation9_spill] sm:$0xff] %v1823_v31  ;;  %v82_v32 = vld [vmem:[%s2578_s2 + $0x68] sm:$0xff] }
  0x18   :  { %1581 = vmatprep.subr.bf16.mxu0 %v1637_v12  ;;  %1616 = vmatprep.subr.bf16.mxu1 %v1637_v12  ;;  %v1648_v33 = vld [vmem:[%s2577_s1 + $0x28] sm:$0xff]   ;;  %v1840_v35 = vld [vmem:[%s2579_s3 + $0x78] sm:$0xff]  ;;  %v1650_v37 = vld [vmem:[%s2577_s1 + $0x30] sm:$0xff]  }
  0x19   :  { %v1649_v34 = vld [vmem:[%s2577_s1 + $0x68] sm:$0xff]   ;;  %2630 = vst [vmem:[#allocation10_spill] sm:$0xff] %v1840_v35  ;;  %v84_v36 = vld [vmem:[%s2578_s2 + $0x78] sm:$0xff]  ;;  %v1651_v38 = vld [vmem:[%s2577_s1 + $0x70] sm:$0xff]  }
  0x1a   :  { %659 = vperm.xlu0 %1626, %v1755_v15   ;;  %128 = vperm.xlu1 %1625, %v74_v16   ;;  %v1857_v39 = vld [vmem:[%s2579_s3 + $0x88] sm:$0xff]  ;;  %v1652_v41 = vld [vmem:[%s2577_s1 + $0x38] sm:$0xff]   ;;  %v69_v58 = vld [vmem:[%s2578_s2] sm:$0xff] }
  0x1b   :  { %1582 = vmatpush3.bf16.msra.mxu0 %v1637_v12  ;;  %1618 = vmatpush3.bf16.msra.mxu1 %v1637_v12  ;;  %v86_v40 = vld [vmem:[%s2578_s2 + $0x88] sm:$0xff]  ;;  %v1653_v42 = vld [vmem:[%s2577_s1 + $0x78] sm:$0xff]   ;;  %v1950_v59 = vld [vmem:[%s2579_s3 + $0x10] sm:$0xff] }
  0x1c   :  { %v1874_v43 = vld [vmem:[%s2579_s3 + $0x98] sm:$0xff]  ;;  %v1885_v45 = vld [vmem:[%s2579_s3 + $0xa8] sm:$0xff]  ;;  %v1959_v61 = vld [vmem:[%s2579_s3 + $0x20] sm:$0xff] }
  0x1d   :  { %2631 = vst [vmem:[#allocation11_spill] sm:$0xff] %v1874_v43  ;;  %v88_v44 = vld [vmem:[%s2578_s2 + $0x98] sm:$0xff]  ;;  %2632 = vst [vmem:[#allocation12_spill] sm:$0xff] %v1885_v45  ;;  %v90_v46 = vld [vmem:[%s2578_s2 + $0xa8] sm:$0xff] }
  0x1e   :  { %1584 = vmatmul.mubr.msk.bf16.vlgmr.msra.gmra.mxu0 %vm350_vm2, %v1640_v17  ;;  %1600 = vmatmul.mubr.msk.bf16.vlgmr.msra.gmra.mxu1 %vm350_vm2, %v1641_v18  ;;  %v1894_v47 = vld [vmem:[%s2579_s3 + $0xb8] sm:$0xff]  ;;  %v1903_v49 = vld [vmem:[%s2579_s3 + $0xc8] sm:$0xff]  ;;  %v73_v62 = vld [vmem:[%s2578_s2 + $0x20] sm:$0xff] }
  0x1f   :  { %669 = vperm.xlu0 %1626, %v1772_v19   ;;  %138 = vperm.xlu1 %1625, %v76_v20   ;;  %2633 = vst [vmem:[#allocation13_spill] sm:$0xff] %v1894_v47  ;;  %v92_v48 = vld [vmem:[%s2578_s2 + $0xb8] sm:$0xff]  ;;  %2634 = vst [vmem:[#allocation14_spill] sm:$0xff] %v1903_v49  ;;  %v94_v50 = vld [vmem:[%s2578_s2 + $0xc8] sm:$0xff] }
  0x20   :  { %1587 = vmatprep.mubr.msk.bf16.mxu0 %vm350_vm2, %v1642_v21  ;;  %1603 = vmatprep.mubr.msk.bf16.mxu1 %vm350_vm2, %v1643_v22  ;;  %v1912_v51 = vld [vmem:[%s2579_s3 + $0xd8] sm:$0xff]  ;;  %v1921_v53 = vld [vmem:[%s2579_s3 + $0xe8] sm:$0xff]  ;;  %v1968_v63 = vld [vmem:[%s2579_s3 + $0x30] sm:$0xff] }
  0x21   :  { %2635 = vst [vmem:[#allocation15_spill] sm:$0xff] %v1912_v51  ;;  %v96_v52 = vld [vmem:[%s2578_s2 + $0xd8] sm:$0xff]  ;;  %2636 = vst [vmem:[#allocation16_spill] sm:$0xff] %v1921_v53  ;;  %v98_v54 = vld [vmem:[%s2578_s2 + $0xe8] sm:$0xff] }
  0x22   :  { %v1930_v55 = vld [vmem:[%s2579_s3 + $0xf8] sm:$0xff]  ;;  %v1939_v57 = vld [vmem:[%s2579_s3 + $0x8] sm:$0xff]  ;;  %v75_v1 = vld [vmem:[%s2578_s2 + $0x30] sm:$0xff] }
  0x23   :  { %679 = vperm.xlu0 %1626, %v1789_v23   ;;  %148 = vperm.xlu1 %1625, %v78_v24   ;;  %2637 = vst [vmem:[#allocation17_spill] sm:$0xff] %v1930_v55  ;;  %v100_v56 = vld [vmem:[%s2578_s2 + $0xf8] sm:$0xff]  ;;  %v70_v60 = vld [vmem:[%s2578_s2 + $0x8] sm:$0xff]  ;;  %v1977_v2 = vld [vmem:[%s2579_s3 + $0x40] sm:$0xff] }
  0x24   :  { %v1986_v5 = vld [vmem:[%s2579_s3 + $0x50] sm:$0xff]  ;;  %v1995_v7 = vld [vmem:[%s2579_s3 + $0x60] sm:$0xff] }
  0x25   :  { %v79_v6 = vld [vmem:[%s2578_s2 + $0x50] sm:$0xff]  ;;  %v81_v9 = vld [vmem:[%s2578_s2 + $0x60] sm:$0xff] }
  0x26   :  { %1588 = vmatmul.mubr.msk.bf16.gmra.mxu0 %vm350_vm2, %v1644_v25  ;;  %1604 = vmatmul.mubr.msk.bf16.gmra.mxu1 %vm350_vm2, %v1645_v26  ;;  %v2004_v10 = vld [vmem:[%s2579_s3 + $0x70] sm:$0xff]  ;;  %v2013_v12 = vld [vmem:[%s2579_s3 + $0x80] sm:$0xff] }
  0x27   :  { %689 = vperm.xlu0 %1626, %v1805_v27   ;;  %158 = vperm.xlu1 %1625, %v80_v28   ;;  %v83_v11 = vld [vmem:[%s2578_s2 + $0x70] sm:$0xff]  ;;  %v85_v13 = vld [vmem:[%s2578_s2 + $0x80] sm:$0xff] }
  0x28   :  { %1591 = vmatprep.mubr.msk.bf16.mxu0 %vm350_vm2, %v1646_v29  ;;  %1607 = vmatprep.mubr.msk.bf16.mxu1 %vm350_vm2, %v1647_v30  ;;  %v2022_v14 = vld [vmem:[%s2579_s3 + $0x90] sm:$0xff]  ;;  %v2031_v17 = vld [vmem:[%s2579_s3 + $0xa0] sm:$0xff] }
  0x29   :  { %2638 = vst [vmem:[#allocation18_spill] sm:$0xff] %v2022_v14  ;;  %v87_v16 = vld [vmem:[%s2578_s2 + $0x90] sm:$0xff]  ;;  %2639 = vst [vmem:[#allocation19_spill] sm:$0xff] %v2031_v17  ;;  %v89_v18 = vld [vmem:[%s2578_s2 + $0xa0] sm:$0xff] }
  0x2a   :  { %v2040_v20 = vld [vmem:[%s2579_s3 + $0xb0] sm:$0xff]  ;;  %v2049_v22 = vld [vmem:[%s2579_s3 + $0xc0] sm:$0xff] }
  0x2b   :  { %699 = vperm.xlu0 %1626, %v1823_v31   ;;  %168 = vperm.xlu1 %1625, %v82_v32   ;;  %2640 = vst [vmem:[#allocation20_spill] sm:$0xff] %v2040_v20  ;;  %v91_v21 = vld [vmem:[%s2578_s2 + $0xb0] sm:$0xff]  ;;  %2641 = vst [vmem:[#allocation21_spill] sm:$0xff] %v2049_v22  ;;  %v93_v24 = vld [vmem:[%s2578_s2 + $0xc0] sm:$0xff] }
  0x2c   :  { %v2058_v25 = vld [vmem:[%s2579_s3 + $0xd0] sm:$0xff]  ;;  %v2067_v28 = vld [vmem:[%s2579_s3 + $0xe0] sm:$0xff] }
  0x2d   :  { %2642 = vst [vmem:[#allocation22_spill] sm:$0xff] %v2058_v25  ;;  %v95_v26 = vld [vmem:[%s2578_s2 + $0xd0] sm:$0xff]  ;;  %2643 = vst [vmem:[#allocation23_spill] sm:$0xff] %v2067_v28  ;;  %v97_v29 = vld [vmem:[%s2578_s2 + $0xe0] sm:$0xff] }
  0x2e   :  { %1592 = vmatmul.mubr.msk.bf16.gmra.mxu0 %vm350_vm2, %v1648_v33  ;;  %1608 = vmatmul.mubr.msk.bf16.gmra.mxu1 %vm350_vm2, %v1649_v34  ;;  %v2080_v33 = vld [vmem:[%s2579_s3 + $0xf0] sm:$0xff]  ;;  %s1558_s3 = sld [smem:[#allocation2 + $0x3]] }
  0x2f   :  { %709 = vperm.xlu0 %1626, %v1840_v35   ;;  %178 = vperm.xlu1 %1625, %v84_v36   ;;  %2644 = vst [vmem:[#allocation24_spill] sm:$0xff] %v2080_v33  ;;  %v99_v34 = vld [vmem:[%s2578_s2 + $0xf0] sm:$0xff] }
  0x30   :  { %1595 = vmatprep.mubr.msk.bf16.mxu0 %vm350_vm2, %v1650_v37  ;;  %1611 = vmatprep.mubr.msk.bf16.mxu1 %vm350_vm2, %v1651_v38 }
  0x33   :  { %719 = vperm.xlu0 %1626, %v1857_v39   ;;  %188 = vperm.xlu1 %1625, %v86_v40  }
  0x36   :  { %1596 = vmatmul.mubr.msk.bf16.gmra.mxu0 %vm350_vm2, %v1652_v41  ;;  %1612 = vmatmul.mubr.msk.bf16.gmra.mxu1 %vm350_vm2, %v1653_v42 }
  0x37   :  { %729 = vperm.xlu0 %1626, %v1874_v43   ;;  %198 = vperm.xlu1 %1625, %v88_v44  }
  0x3b   :  { %739 = vperm.xlu0 %1626, %v1885_v45   ;;  %208 = vperm.xlu1 %1625, %v90_v46  }
  0x3f   :  { %749 = vperm.xlu0 %1626, %v1894_v47   ;;  %218 = vperm.xlu1 %1625, %v92_v48  }
  0x43   :  { %759 = vperm.xlu0 %1626, %v1903_v49   ;;  %228 = vperm.xlu1 %1625, %v94_v50  }
  0x47   :  { %769 = vperm.xlu0 %1626, %v1912_v51   ;;  %238 = vperm.xlu1 %1625, %v96_v52  }
  0x4b   :  { %779 = vperm.xlu0 %1626, %v1921_v53   ;;  %248 = vperm.xlu1 %1625, %v98_v54  }
  0x4f   :  { %789 = vperm.xlu0 %1626, %v1930_v55   ;;  %258 = vperm.xlu1 %1625, %v100_v56  }
  0x53   :  { %1628 = vset.pattern.permute.xlu0 %v1683_v4  ;;  %1627 = vset.pattern.permute.xlu1 %v1682_v3  ;;  %v77_v3 = vld [vmem:[%s2578_s2 + $0x40] sm:$0xff]  ;;  %s1061_s2 = sld [smem:[#allocation2]] }
  0x54   :  { %639 = vperm.xlu1 %1627, %v1939_v57   ;;  %103 = vperm.xlu0 %1628, %v69_v58  }
  0x58   :  { %644 = vperm.xlu1 %1627, %v1950_v59   ;;  %108 = vperm.xlu0 %1628, %v70_v60  }
  0x5c   :  { %654 = vperm.xlu1 %1627, %v1959_v61   ;;  %123 = vperm.xlu0 %1628, %v73_v62  }
  0x60   :  { %664 = vperm.xlu1 %1627, %v1968_v63   ;;  %133 = vperm.xlu0 %1628, %v75_v1  }
  0x64   :  { %674 = vperm.xlu1 %1627, %v1977_v2   ;;  %143 = vperm.xlu0 %1628, %v77_v3  }
  0x68   :  { %684 = vperm.xlu1 %1627, %v1986_v5   ;;  %153 = vperm.xlu0 %1628, %v79_v6  }
  0x6c   :  { %694 = vperm.xlu1 %1627, %v1995_v7   ;;  %163 = vperm.xlu0 %1628, %v81_v9  }
  0x70   :  { %704 = vperm.xlu1 %1627, %v2004_v10   ;;  %173 = vperm.xlu0 %1628, %v83_v11  }
  0x74   :  { %714 = vperm.xlu1 %1627, %v2013_v12   ;;  %183 = vperm.xlu0 %1628, %v85_v13  }
  0x78   :  { %724 = vperm.xlu1 %1627, %v2022_v14   ;;  %193 = vperm.xlu0 %1628, %v87_v16  }
  0x7c   :  { %734 = vperm.xlu1 %1627, %v2031_v17   ;;  %203 = vperm.xlu0 %1628, %v89_v18  }
  0x80   :  { %744 = vperm.xlu1 %1627, %v2040_v20   ;;  %213 = vperm.xlu0 %1628, %v91_v21  }
  0x84   :  { %754 = vperm.xlu1 %1627, %v2049_v22   ;;  %223 = vperm.xlu0 %1628, %v93_v24  }
  0x88   :  { %764 = vperm.xlu1 %1627, %v2058_v25   ;;  %233 = vperm.xlu0 %1628, %v95_v26  }
  0x8c   :  { %774 = vperm.xlu1 %1627, %v2067_v28   ;;  %243 = vperm.xlu0 %1628, %v97_v29   ;;  %v2073_v30 = vpop.permute.xlu0 %634  ;;  %v2075_v32 = vpop.permute.xlu1 %113 }
  0x90   :  { %784 = vperm.xlu1 %1627, %v2080_v33   ;;  %253 = vperm.xlu0 %1628, %v99_v34  }
  0x91   :  { %v2086_v36 = vpop.permute.xlu0 %649  ;;  %v2088_v37 = vpop.permute.xlu1 %118 }
  0x94   :  { %1629 = vset.pattern.permute.xlu1 %v1683_v4  ;;  %869 = vperm.xlu0 %1628, %v1939_v57  }
  0x95   :  { %865 = vperm.xlu1 %1629, %v1723_v0   ;;  %v2093_v38 = vpop.permute.xlu0 %659  ;;  %v2095_v40 = vpop.permute.xlu1 %128 }
  0x98   :  { %881 = vperm.xlu0 %1628, %v1959_v61  }
  0x99   :  { %873 = vperm.xlu1 %1629, %v1950_v59  }
  0x9a   :  { %v2099_v41 = vpop.permute.xlu0 %669  ;;  %v2101_v42 = vpop.permute.xlu1 %138 }
  0x9c   :  { %889 = vperm.xlu0 %1628, %v1968_v63  }
  0x9d   :  { %877 = vperm.xlu1 %1629, %v1737_v8  }
  0x9e   :  { %v2105_v4 = vpop.permute.xlu0 %679  ;;  %v2107_v44 = vpop.permute.xlu1 %148 }
  0xa0   :  { %897 = vperm.xlu0 %1628, %v1977_v2  }
  0xa1   :  { %885 = vperm.xlu1 %1629, %v1755_v15  }
  0xa2   :  { %v2111_v46 = vpop.permute.xlu0 %689  ;;  %v2113_v48 = vpop.permute.xlu1 %158 }
  0xa4   :  { %905 = vperm.xlu0 %1628, %v1986_v5  }
  0xa5   :  { %893 = vperm.xlu1 %1629, %v1772_v19  }
  0xa6   :  { %v2117_v50 = vpop.permute.xlu0 %699  ;;  %v2119_v52 = vpop.permute.xlu1 %168 }
  0xa8   :  { %913 = vperm.xlu0 %1628, %v1995_v7  }
  0xa9   :  { %901 = vperm.xlu1 %1629, %v1789_v23  }
  0xaa   :  { %v2123_v54 = vpop.permute.xlu0 %709  ;;  %v2125_v56 = vpop.permute.xlu1 %178 }
  0xac   :  { %921 = vperm.xlu0 %1628, %v2004_v10  }
  0xad   :  { %909 = vperm.xlu1 %1629, %v1805_v27  }
  0xae   :  { %v2129_v58 = vpop.permute.xlu0 %719  ;;  %v2131_v60 = vpop.permute.xlu1 %188 }
  0xaf   :  { %2645 = vst [vmem:[#allocation25_spill] sm:$0xff] %v2129_v58 }
  0xb0   :  { %929 = vperm.xlu0 %1628, %v2013_v12  }
  0xb1   :  { %917 = vperm.xlu1 %1629, %v1823_v31  }
  0xb2   :  { %v2135_v62 = vpop.permute.xlu0 %729  ;;  %v2137_v1 = vpop.permute.xlu1 %198 }
  0xb3   :  { %2646 = vst [vmem:[#allocation26_spill] sm:$0xff] %v2135_v62 }
  0xb4   :  { %937 = vperm.xlu0 %1628, %v2022_v14  }
  0xb5   :  { %925 = vperm.xlu1 %1629, %v1840_v35  }
  0xb6   :  { %v2141_v3 = vpop.permute.xlu0 %739  ;;  %v2143_v6 = vpop.permute.xlu1 %208 }
  0xb7   :  { %2647 = vst [vmem:[#allocation27_spill] sm:$0xff] %v2141_v3 }
  0xb8   :  { %945 = vperm.xlu0 %1628, %v2031_v17  }
  0xb9   :  { %933 = vperm.xlu1 %1629, %v1857_v39  }
  0xba   :  { %v2147_v9 = vpop.permute.xlu0 %749  ;;  %v2149_v11 = vpop.permute.xlu1 %218 }
  0xbb   :  { %2648 = vst [vmem:[#allocation28_spill] sm:$0xff] %v2147_v9  ;;  %2649 = vst [vmem:[#allocation29_spill] sm:$0xff] %v2149_v11 }
  0xbc   :  { %953 = vperm.xlu0 %1628, %v2040_v20   ;;  %v2606_v20 = vmov 1  }
  0xbd   :  { %941 = vperm.xlu1 %1629, %v1874_v43  }
  0xbe   :  { %v2153_v13 = vpop.permute.xlu0 %759  ;;  %v2155_v16 = vpop.permute.xlu1 %228 }
  0xbf   :  { %2650 = vst [vmem:[#allocation30_spill] sm:$0xff] %v2153_v13  ;;  %2651 = vst [vmem:[#allocation31_spill] sm:$0xff] %v2155_v16 }
  0xc0   :  { %961 = vperm.xlu0 %1628, %v2049_v22  }
  0xc1   :  { %949 = vperm.xlu1 %1629, %v1885_v45  }
  0xc2   :  { %v2159_v18 = vpop.permute.xlu0 %769  ;;  %v2161_v21 = vpop.permute.xlu1 %238 }
  0xc3   :  { %2652 = vst [vmem:[#allocation32_spill] sm:$0xff] %v2159_v18  ;;  %2653 = vst [vmem:[#allocation33_spill] sm:$0xff] %v2161_v21 }
  0xc4   :  { %969 = vperm.xlu0 %1628, %v2058_v25  }
  0xc5   :  { %957 = vperm.xlu1 %1629, %v1894_v47  }
  0xc6   :  { %v2165_v24 = vpop.permute.xlu0 %779  ;;  %v2167_v26 = vpop.permute.xlu1 %248 }
  0xc7   :  { %2654 = vst [vmem:[#allocation34_spill] sm:$0xff] %v2165_v24  ;;  %2655 = vst [vmem:[#allocation35_spill] sm:$0xff] %v2167_v26 }
  0xc8   :  { %977 = vperm.xlu0 %1628, %v2067_v28  }
  0xc9   :  { %965 = vperm.xlu1 %1629, %v1903_v49  }
  0xca   :  { %v2171_v29 = vpop.permute.xlu0 %789  ;;  %v2173_v34 = vpop.permute.xlu1 %258 }
  0xcb   :  { %2656 = vst [vmem:[#allocation36_spill] sm:$0xff] %v2171_v29  ;;  %2657 = vst [vmem:[#allocation37_spill] sm:$0xff] %v2173_v34 }
  0xcc   :  { %985 = vperm.xlu0 %1628, %v2080_v33  }
  0xcd   :  { %973 = vperm.xlu1 %1629, %v1912_v51  }
  0xcf   :  { %v640_v22 = vpop.permute.xlu1 %639  ;;  %v104_v25 = vpop.permute.xlu0 %103 }
  0xd0   :  { %1630 = vset.pattern.permute.xlu0 %v2606_v20 }
  0xd1   :  { %981 = vperm.xlu1 %1629, %v1921_v53   ;;  %1081 = vperm.xlu0 %1630, %v1723_v0  }
  0xd3   :  { %v645_v28 = vpop.permute.xlu1 %644  ;;  %v109_v47 = vpop.permute.xlu0 %108 }
  0xd5   :  { %989 = vperm.xlu1 %1629, %v1930_v55   ;;  %1093 = vperm.xlu0 %1630, %v1737_v8  }
  0xd7   :  { %v655_v29 = vpop.permute.xlu1 %654  ;;  %v124_v34 = vpop.permute.xlu0 %123 }
  0xd9   :  { %1631 = vset.pattern.permute.xlu1 %v2606_v20  ;;  %1101 = vperm.xlu0 %1630, %v1755_v15  }
  0xda   :  { %1085 = vperm.xlu1 %1631, %v1939_v57  }
  0xdb   :  { %v2185_v33 = vpop.permute.xlu1 %664  ;;  %v134_v51 = vpop.permute.xlu0 %133 }
  0xdd   :  { %1109 = vperm.xlu0 %1630, %v1772_v19  }
  0xde   :  { %1089 = vperm.xlu1 %1631, %v1950_v59   ;;  %v1585_v53 = vpop.f32.mrf.mxu0  ;;  %v2189_v49 = vpop.f32.mrf.mxu1 }
  0xdf   :  { %v2191_v55 = vpop.permute.xlu1 %674  ;;  %v144_v45 = vpop.permute.xlu0 %143  ;;  %v449_v14 = vadd.f32 %v1585_v53, %v2075_v32 }
  0xe0   :  { %v440_v17 = vpop.f32.mrf.mxu0  ;;  %v2193_v24 = vpop.f32.mrf.mxu1 }
  0xe1   :  { %v441_v20 = vadd.f32 %v440_v17, %v104_v25  ;;  %1117 = vperm.xlu0 %1630, %v1789_v23   ;;  %v2209_v23 = vmax.f32 %v449_v14, 0.0 }
  0xe2   :  { %1097 = vperm.xlu1 %1631, %v1959_v61   ;;  %v1586_v43 = vpop.f32.mrf.mxu0  ;;  %v2197_v18 = vpop.f32.mrf.mxu1 }
  0xe3   :  { %v2200_v26 = vpop.permute.xlu1 %684  ;;  %v154_v13 = vpop.permute.xlu0 %153  ;;  %v2202_v9 = vmax.f32 %v441_v20, 0.0  ;;  %v452_v16 = vadd.f32 %v1586_v43, %v2088_v37 }
  0xe4   :  { %v443_v21 = vpop.f32.mrf.mxu0  ;;  %v2206_v17 = vpop.f32.mrf.mxu1 }
  0xe5   :  { %2658 = vst [vmem:[#allocation38_spill] sm:$0xff] %v2202_v9  ;;  %v444_v3 = vadd.f32 %v443_v21, %v109_v47  ;;  %1125 = vperm.xlu0 %1630, %v1805_v27   ;;  %v792_v43 = vmul.f32 %v2073_v30, %v2202_v9  ;;  %v2219_v47 = vmax.f32 %v452_v16, 0.0 }
  0xe6   :  { %1105 = vperm.xlu1 %1631, %v1968_v63   ;;  %v1589_v25 = vpop.f32.mrf.mxu0  ;;  %v2223_v27 = vpop.f32.mrf.mxu1 }
  0xe7   :  { %v2211_v19 = vmax.f32 %v444_v3, 0.0  ;;  %v2213_v53 = vpop.permute.xlu1 %694  ;;  %v2215_v32 = vpop.permute.xlu0 %163  ;;  %v794_v3 = vmul.f32 %v645_v28, %v2209_v23  ;;  %v465_v11 = vadd.f32 %v1589_v25, %v134_v51 }
  0xe8   :  { %v456_v20 = vpop.f32.mrf.mxu0  ;;  %v2236_v9 = vpop.f32.mrf.mxu1 }
  0xe9   :  { %v793_v37 = vmul.f32 %v640_v22, %v2211_v19  ;;  %v457_v21 = vadd.f32 %v456_v20, %v124_v34  ;;  %1133 = vperm.xlu0 %1630, %v1823_v31   ;;  %v795_v22 = vmul.f32 %v2086_v36, %v2219_v47  ;;  %v2239_v28 = vmax.f32 %v465_v11, 0.0 }
  0xea   :  { %1113 = vperm.xlu1 %1631, %v1977_v2   ;;  %v1590_v14 = vpop.f32.mrf.mxu0  ;;  %v2251_v11 = vpop.f32.mrf.mxu1 }
  0xeb   :  { %v824_v62 = vadd.f32 %v793_v37, %v792_v43  ;;  %v2227_v15 = vmax.f32 %v457_v21, 0.0  ;;  %v2229_v58 = vpop.permute.xlu1 %704  ;;  %v174_v30 = vpop.permute.xlu0 %173  ;;  %v468_v20 = vadd.f32 %v1590_v14, %v2101_v42 }
  0xec   :  { %v459_v16 = vpop.f32.mrf.mxu0 }
  0xed   :  { %v825_v34 = vadd.f32 %v824_v62, %v794_v3  ;;  %v460_v31 = vadd.f32 %v459_v16, %v2095_v40  ;;  %1141 = vperm.xlu0 %1630, %v1840_v35   ;;  %v796_v25 = vmul.f32 %v655_v29, %v2227_v15  ;;  %v2246_v40 = vmax.f32 %v468_v20, 0.0 }
  0xee   :  { %1121 = vperm.xlu1 %1631, %v1986_v5   ;;  %v1593_v51 = vpop.f32.mrf.mxu0 }
  0xef   :  { %v826_v43 = vadd.f32 %v825_v34, %v795_v22  ;;  %v2242_v37 = vmax.f32 %v460_v31, 0.0  ;;  %v2244_v36 = vpop.permute.xlu1 %714  ;;  %v184_v62 = vpop.permute.xlu0 %183  ;;  %v798_v31 = vmul.f32 %v2185_v33, %v2239_v28  ;;  %v481_v22 = vadd.f32 %v1593_v51, %v154_v13 }
  0xf0   :  { %v472_v42 = vpop.f32.mrf.mxu0  ;;  %v2265_v33 = vpop.f32.mrf.mxu1 }
  0xf1   :  { %2659 = vst [vmem:[#allocation39_spill] sm:$0xff] %v2242_v37  ;;  %v827_v21 = vadd.f32 %v826_v43, %v796_v25  ;;  %v797_v14 = vmul.f32 %v2093_v38, %v2242_v37  ;;  %v473_v3 = vadd.f32 %v472_v42, %v144_v45  ;;  %1149 = vperm.xlu0 %1630, %v1857_v39   ;;  %v2621_v37 = vmov 2  }
  0xf2   :  { %1129 = vperm.xlu1 %1631, %v1995_v7   ;;  %v1594_v29 = vpop.f32.mrf.mxu0  ;;  %v799_v45 = vmul.f32 %v2099_v41, %v2246_v40  ;;  %v2269_v51 = vmax.f32 %v481_v22, 0.0  ;;  %v2282_v22 = vpop.f32.mrf.mxu1 }
  0xf3   :  { %v828_v16 = vadd.f32 %v827_v21, %v797_v14  ;;  %v2256_v34 = vmax.f32 %v473_v3, 0.0  ;;  %v2258_v20 = vpop.permute.xlu1 %724  ;;  %v194_v25 = vpop.permute.xlu0 %193  ;;  %v484_v42 = vadd.f32 %v1594_v29, %v2113_v48 }
  0xf4   :  { %v475_v43 = vpop.f32.mrf.mxu0 }
  0xf5   :  { %v829_v38 = vadd.f32 %v828_v16, %v798_v31  ;;  %v476_v35 = vadd.f32 %v475_v43, %v2107_v44  ;;  %1633 = vset.pattern.permute.xlu0 %v2621_v37  ;;  %v800_v41 = vmul.f32 %v2191_v55, %v2256_v34  ;;  %v2277_v31 = vmax.f32 %v484_v42, 0.0 }
  0xf6   :  { %1137 = vperm.xlu1 %1631, %v2004_v10   ;;  %1304 = vperm.xlu0 %1633, %v1939_v57   ;;  %v1597_v13 = vpop.f32.mrf.mxu0  ;;  %v802_v55 = vmul.f32 %v2200_v26, %v2269_v51  ;;  %v505_v37 = vadd.f32 %v2193_v24, %v184_v62  ;;  %v2661_v26 = vmov 2  }
  0xf7   :  { %v830_v21 = vadd.f32 %v829_v38, %v799_v45  ;;  %v2273_v14 = vmax.f32 %v476_v35, 0.0  ;;  %v2275_v48 = vpop.permute.xlu1 %734  ;;  %v204_v44 = vpop.permute.xlu0 %203  ;;  %v497_v45 = vadd.f32 %v1597_v13, %v174_v30 }
  0xf8   :  { %v488_v3 = vpop.f32.mrf.mxu0 }
  0xf9   :  { %2660 = vst [vmem:[#allocation40_spill] sm:$0xff] %v2273_v14  ;;  %v831_v29 = vadd.f32 %v830_v21, %v800_v41  ;;  %v801_v16 = vmul.f32 %v2105_v4, %v2273_v14  ;;  %v489_v57 = vadd.f32 %v488_v3, %v2215_v32  ;;  %v803_v32 = vmul.f32 %v2111_v46, %v2277_v31  ;;  %v536_v14 = vpop.f32.mrf.mxu1 }
  0xfa   :  { %1145 = vperm.xlu1 %1631, %v2013_v12   ;;  %1316 = vperm.xlu0 %1633, %v1959_v61   ;;  %v1598_v35 = vpop.f32.mrf.mxu0  ;;  %v2299_v30 = vmax.f32 %v497_v45, 0.0 }
  0xfb   :  { %v832_v43 = vadd.f32 %v831_v29, %v801_v16  ;;  %v2288_v38 = vmax.f32 %v489_v57, 0.0  ;;  %v2290_v42 = vpop.permute.xlu1 %744  ;;  %v214_v41 = vpop.permute.xlu0 %213  ;;  %v500_v3 = vadd.f32 %v1598_v35, %v2125_v56  ;;  %v508_v56 = vadd.f32 %v2206_v17, %v2131_v60 }
  0xfc   :  { %v491_v4 = vpop.f32.mrf.mxu0  ;;  %v2314_v57 = vpop.f32.mrf.mxu1  ;;  %v806_v35 = vmul.f32 %v2229_v58, %v2299_v30 }
  0xfd   :  { %v833_v21 = vadd.f32 %v832_v43, %v802_v55  ;;  %v492_v61 = vadd.f32 %v491_v4, %v2119_v52  ;;  %v804_v13 = vmul.f32 %v2213_v53, %v2288_v38  ;;  %v2310_v62 = vmax.f32 %v500_v3, 0.0 }
  0xfe   :  { %1632 = vset.pattern.permute.xlu1 %v2661_v26  ;;  %1324 = vperm.xlu0 %1633, %v1968_v63   ;;  %v2317_v53 = vmax.f32 %v505_v37, 0.0  ;;  %v2327_v43 = vmax.f32 %v508_v56, 0.0  ;;  %v539_v45 = vpop.f32.mrf.mxu1 }
  0xff   :  { %v834_v29 = vadd.f32 %v833_v21, %v803_v32  ;;  %v2303_v16 = vmax.f32 %v492_v61, 0.0  ;;  %1300 = vperm.xlu1 %1632, %v1723_v0   ;;  %v2306_v46 = vpop.permute.xlu1 %754  ;;  %v224_v52 = vpop.permute.xlu0 %223  ;;  %v513_v0 = vadd.f32 %v2189_v49, %v194_v25  ;;  %v2663_v61 = vld [vmem:[#allocation5_spill] sm:$0xff] }
 0x100   :  { %v808_v49 = vmul.f32 %v2244_v36, %v2317_v53  ;;  %v1613_v36 = vpop.f32.mrf.mxu1 }
 0x101   :  { %v835_v24 = vadd.f32 %v834_v29, %v804_v13  ;;  %v805_v63 = vmul.f32 %v2117_v50, %v2303_v16  ;;  %v516_v50 = vadd.f32 %v2197_v18, %v2137_v1  ;;  %v2334_v58 = vmax.f32 %v513_v0, 0.0  ;;  %v2664_v13 = vld [vmem:[#allocation29_spill] sm:$0xff] }
 0x102   :  { %1332 = vperm.xlu0 %1633, %v1977_v2   ;;  %v807_v2 = vmul.f32 %v2123_v54, %v2310_v62  ;;  %v524_v54 = vadd.f32 %v2265_v33, %v2143_v6  ;;  %v532_v29 = vadd.f32 %v2251_v11, %v2664_v13  ;;  %v537_v0 = vadd.f32 %v536_v14, %v224_v52  ;;  %v2672_v13 = vld [vmem:[#allocation33_spill] sm:$0xff] }
 0x103   :  { %v836_v55 = vadd.f32 %v835_v24, %v805_v63  ;;  %1308 = vperm.xlu1 %1632, %v1950_v59   ;;  %v2323_v60 = vpop.permute.xlu1 %764  ;;  %v234_v17 = vpop.permute.xlu0 %233  ;;  %v521_v59 = vadd.f32 %v2236_v9, %v204_v44  ;;  %v2342_v4 = vmax.f32 %v516_v50, 0.0  ;;  %v810_v9 = vmul.f32 %v2258_v20, %v2334_v58 }
 0x104   :  { %v2357_v56 = vmax.f32 %v524_v54, 0.0  ;;  %v552_v20 = vpop.f32.mrf.mxu1  ;;  %v2367_v11 = vmax.f32 %v532_v29, 0.0  ;;  %v545_v14 = vadd.f32 %v2282_v22, %v234_v17  ;;  %v548_v29 = vadd.f32 %v2314_v57, %v2672_v13 }
 0x105   :  { %v837_v37 = vadd.f32 %v836_v55, %v806_v35  ;;  %v2349_v44 = vmax.f32 %v521_v59, 0.0  ;;  %v2666_v55 = vld [vmem:[#allocation6_spill] sm:$0xff]  ;;  %v2668_v59 = vld [vmem:[#allocation31_spill] sm:$0xff] }
 0x106   :  { %1340 = vperm.xlu0 %1633, %v1986_v5   ;;  %v2662_v5 = vld [vmem:[#allocation25_spill] sm:$0xff] }
 0x107   :  { %v838_v25 = vadd.f32 %v837_v37, %v807_v2  ;;  %1312 = vperm.xlu1 %1632, %v1737_v8   ;;  %v2338_v1 = vpop.permute.xlu1 %774  ;;  %v244_v18 = vpop.permute.xlu0 %243  ;;  %v809_v32 = vmul.f32 %v2662_v5, %v2327_v43  ;;  %v529_v8 = vadd.f32 %v2223_v27, %v214_v41  ;;  %v812_v27 = vmul.f32 %v2275_v48, %v2349_v44  ;;  %v2667_v2 = vld [vmem:[#allocation27_spill] sm:$0xff]  ;;  %v2669_v5 = vld [vmem:[#allocation38_spill] sm:$0xff] }
 0x108   :  { %v813_v37 = vmul.f32 %v2667_v2, %v2357_v56  ;;  %v2396_v2 = vmax.f32 %v548_v29, 0.0 }
 0x109   :  { %v839_v21 = vadd.f32 %v838_v25, %v808_v49  ;;  %v2364_v41 = vmax.f32 %v529_v8, 0.0  ;;  %v540_v25 = vadd.f32 %v539_v45, %v2668_v59  ;;  %v2670_v8 = vld [vmem:[#allocation7_spill] sm:$0xff] }
 0x10a   :  { %1348 = vperm.xlu0 %1633, %v1995_v7   ;;  %v2665_v7 = vld [vmem:[#allocation26_spill] sm:$0xff] }
 0x10b   :  { %v840_v3 = vadd.f32 %v839_v21, %v809_v32  ;;  %1320 = vperm.xlu1 %1632, %v2663_v61   ;;  %v2353_v6 = vpop.permute.xlu1 %784  ;;  %v254_v33 = vpop.permute.xlu0 %253  ;;  %v811_v24 = vmul.f32 %v2665_v7, %v2342_v4  ;;  %v814_v52 = vmul.f32 %v2290_v42, %v2364_v41  ;;  %v2380_v21 = vmax.f32 %v537_v0, 0.0 }
 0x10c   :  { %v2374_v32 = vpop.f32.mrf.mxu1 }
 0x10d   :  { %v841_v63 = vadd.f32 %v840_v3, %v810_v9  ;;  %v2671_v3 = vld [vmem:[#allocation28_spill] sm:$0xff]  ;;  %v816_v0 = vmul.f32 %v2306_v46, %v2380_v21 }
 0x10e   :  { %1356 = vperm.xlu0 %1633, %v2004_v10   ;;  %v815_v61 = vmul.f32 %v2671_v3, %v2367_v11  ;;  %v555_v42 = vpop.f32.mrf.mxu1 }
 0x10f   :  { %v842_v35 = vadd.f32 %v841_v63, %v811_v24  ;;  %1328 = vperm.xlu1 %1632, %v2666_v55   ;;  %v870_v50 = vpop.permute.xlu0 %869  ;;  %v2387_v24 = vmax.f32 %v540_v25, 0.0  ;;  %v2390_v63 = vmax.f32 %v545_v14, 0.0  ;;  %v2675_v25 = vld [vmem:[#allocation35_spill] sm:$0xff]  ;;  %v561_v14 = vadd.f32 %v1613_v36, %v254_v33 }
 0x110   :  { %v866_v49 = vpop.permute.xlu1 %865  ;;  %v993_v10 = vmul.f32 %v870_v50, %v2211_v19  ;;  %v2673_v50 = vld [vmem:[#allocation8_spill] sm:$0xff]  ;;  %v2680_v36 = vld [vmem:[#allocation11_spill] sm:$0xff] }
 0x111   :  { %v843_v54 = vadd.f32 %v842_v35, %v812_v27  ;;  %v992_v48 = vmul.f32 %v866_v49, %v2669_v5  ;;  %v553_v27 = vadd.f32 %v552_v20, %v244_v18  ;;  %v2674_v49 = vld [vmem:[#allocation30_spill] sm:$0xff] }
 0x112   :  { %1364 = vperm.xlu0 %1633, %v2013_v12   ;;  %v817_v59 = vmul.f32 %v2674_v49, %v2387_v24  ;;  %v2676_v20 = vld [vmem:[#allocation18_spill] sm:$0xff] }
 0x113   :  { %v844_v9 = vadd.f32 %v843_v54, %v813_v37  ;;  %1336 = vperm.xlu1 %1632, %v2670_v8   ;;  %v882_v45 = vpop.permute.xlu0 %881  ;;  %v1024_v12 = vadd.f32 %v993_v10, %v992_v48  ;;  %v556_v54 = vadd.f32 %v555_v42, %v2675_v25  ;;  %v2404_v46 = vmax.f32 %v553_v27, 0.0  ;;  %v2677_v8 = vld [vmem:[#allocation9_spill] sm:$0xff] }
 0x114   :  { %v874_v7 = vpop.permute.xlu1 %873 }
 0x115   :  { %v845_v22 = vadd.f32 %v844_v9, %v814_v52  ;;  %v994_v17 = vmul.f32 %v874_v7, %v2209_v23  ;;  %v996_v52 = vmul.f32 %v882_v45, %v2227_v15  ;;  %v2411_v7 = vmax.f32 %v556_v54, 0.0 }
 0x116   :  { %1368 = vperm.xlu0 %1633, %v1857_v39   ;;  %v818_v39 = vmul.f32 %v2323_v60, %v2390_v63  ;;  %v2679_v60 = vld [vmem:[#allocation39_spill] sm:$0xff]  ;;  %v820_v42 = vmul.f32 %v2338_v1, %v2404_v46  ;;  %v2417_v45 = vmax.f32 %v561_v14, 0.0 }
 0x117   :  { %v846_v35 = vadd.f32 %v845_v22, %v815_v61  ;;  %v1025_v55 = vadd.f32 %v1024_v12, %v994_v17  ;;  %1344 = vperm.xlu1 %1632, %v2673_v50   ;;  %v890_v57 = vpop.permute.xlu0 %889  ;;  %v2678_v61 = vld [vmem:[#allocation32_spill] sm:$0xff]  ;;  %v2683_v1 = vld [vmem:[#allocation19_spill] sm:$0xff] }
 0x118   :  { %v878_v37 = vpop.permute.xlu1 %877  ;;  %v819_v13 = vmul.f32 %v2678_v61, %v2396_v2  ;;  %v998_v27 = vmul.f32 %v890_v57, %v2239_v28 }
 0x119   :  { %v847_v10 = vadd.f32 %v846_v35, %v816_v0  ;;  %v995_v18 = vmul.f32 %v878_v37, %v2219_v47  ;;  %v2681_v35 = vld [vmem:[#allocation10_spill] sm:$0xff] }
 0x11a   :  { %1372 = vperm.xlu0 %1633, %v2676_v20   ;;  %v2682_v37 = vld [vmem:[#allocation34_spill] sm:$0xff] }
 0x11b   :  { %v848_v48 = vadd.f32 %v847_v10, %v817_v59  ;;  %v1026_v9 = vadd.f32 %v1025_v55, %v995_v18  ;;  %1352 = vperm.xlu1 %1632, %v2677_v8   ;;  %v898_v3 = vpop.permute.xlu0 %897  ;;  %v821_v49 = vmul.f32 %v2682_v37, %v2411_v7  ;;  %v822_v10 = vmul.f32 %v2353_v6, %v2417_v45  ;;  %v2685_v8 = vld [vmem:[#allocation40_spill] sm:$0xff]  ;;  %v2688_v37 = vld [vmem:[#allocation13_spill] sm:$0xff] }
 0x11c   :  { %v886_v29 = vpop.permute.xlu1 %885  ;;  %v1000_v57 = vmul.f32 %v898_v3, %v2256_v34 }
 0x11d   :  { %v849_v22 = vadd.f32 %v848_v48, %v818_v39  ;;  %v997_v12 = vmul.f32 %v886_v29, %v2679_v60  ;;  %v1027_v17 = vadd.f32 %v1026_v9, %v996_v52  ;;  %v2684_v48 = vmov 1   ;;  %v2686_v29 = vld [vmem:[#allocation12_spill] sm:$0xff] }
 0x11e   :  { %1376 = vperm.xlu0 %1633, %v2680_v36  }
 0x11f   :  { %v850_v33 = vadd.f32 %v849_v22, %v819_v13  ;;  %v1028_v0 = vadd.f32 %v1027_v17, %v997_v12  ;;  %1360 = vperm.xlu1 %1632, %v2681_v35   ;;  %v906_v55 = vpop.permute.xlu0 %905 }
 0x120   :  { %v894_v50 = vpop.permute.xlu1 %893  ;;  %v1002_v22 = vmul.f32 %v906_v55, %v2269_v51 }
 0x121   :  { %v851_v59 = vadd.f32 %v850_v33, %v820_v42  ;;  %v999_v25 = vmul.f32 %v894_v50, %v2246_v40  ;;  %v1029_v54 = vadd.f32 %v1028_v0, %v998_v27  ;;  %v2687_v33 = vld [vmem:[#allocation20_spill] sm:$0xff] }
 0x122   :  { %1380 = vperm.xlu0 %1633, %v2683_v1  }
 0x123   :  { %v852_v18 = vadd.f32 %v851_v59, %v821_v49  ;;  %v1030_v39 = vadd.f32 %v1029_v54, %v999_v25  ;;  %1634 = vset.pattern.permute.xlu1 %v2684_v48  ;;  %v914_v14 = vpop.permute.xlu0 %913 }
 0x124   :  { %1153 = vperm.xlu1 %1634, %v2676_v20   ;;  %v902_v52 = vpop.permute.xlu1 %901  ;;  %v1004_v20 = vmul.f32 %v914_v14, %v2288_v38 }
 0x125   :  { %v2430_v9 = vadd.f32 %v852_v18, %v822_v10  ;;  %v1001_v61 = vmul.f32 %v902_v52, %v2685_v8  ;;  %v1031_v13 = vadd.f32 %v1030_v39, %v1000_v57  ;;  %v2689_v18 = vld [vmem:[#allocation21_spill] sm:$0xff] }
 0x126   :  { %1384 = vperm.xlu0 %1633, %v2686_v29  }
 0x127   :  { %v1032_v6 = vadd.f32 %v1031_v13, %v1001_v61  ;;  %v922_v12 = vpop.permute.xlu0 %921  ;;  %v2690_v61 = vld [vmem:[#allocation14_spill] sm:$0xff] }
 0x128   :  { %1157 = vperm.xlu1 %1634, %v2680_v36   ;;  %v910_v3 = vpop.permute.xlu1 %909  ;;  %v1006_v36 = vmul.f32 %v922_v12, %v2299_v30 }
 0x129   :  { %v1003_v17 = vmul.f32 %v910_v3, %v2277_v31  ;;  %v1033_v42 = vadd.f32 %v1032_v6, %v1002_v22 }
 0x12a   :  { %1388 = vperm.xlu0 %1633, %v2687_v33  }
 0x12b   :  { %v1034_v27 = vadd.f32 %v1033_v42, %v1003_v17  ;;  %v930_v0 = vpop.permute.xlu0 %929  ;;  %v2691_v17 = vld [vmem:[#allocation22_spill] sm:$0xff] }
 0x12c   :  { %1161 = vperm.xlu1 %1634, %v2683_v1   ;;  %v918_v35 = vpop.permute.xlu1 %917  ;;  %v1008_v1 = vmul.f32 %v930_v0, %v2317_v53 }
 0x12d   :  { %v1005_v50 = vmul.f32 %v918_v35, %v2303_v16  ;;  %v1035_v55 = vadd.f32 %v1034_v27, %v1004_v20 }
 0x12e   :  { %1392 = vperm.xlu0 %1633, %v2688_v37  }
 0x12f   :  { %v1036_v49 = vadd.f32 %v1035_v55, %v1005_v50  ;;  %v938_v59 = vpop.permute.xlu0 %937  ;;  %v2692_v50 = vld [vmem:[#allocation15_spill] sm:$0xff] }
 0x130   :  { %1165 = vperm.xlu1 %1634, %v2686_v29   ;;  %v926_v25 = vpop.permute.xlu1 %925  ;;  %v1010_v13 = vmul.f32 %v938_v59, %v2334_v58 }
 0x131   :  { %v1007_v54 = vmul.f32 %v926_v25, %v2310_v62  ;;  %v1037_v10 = vadd.f32 %v1036_v49, %v1006_v36 }
 0x132   :  { %1396 = vperm.xlu0 %1633, %v2689_v18  }
 0x133   :  { %v1038_v57 = vadd.f32 %v1037_v10, %v1007_v54  ;;  %v946_v39 = vpop.permute.xlu0 %945  ;;  %v2693_v10 = vld [vmem:[#allocation23_spill] sm:$0xff] }
 0x134   :  { %1169 = vperm.xlu1 %1634, %v2687_v33   ;;  %v934_v48 = vpop.permute.xlu1 %933  ;;  %v1012_v42 = vmul.f32 %v946_v39, %v2349_v44 }
 0x135   :  { %v1009_v14 = vmul.f32 %v934_v48, %v2327_v43  ;;  %v1039_v52 = vadd.f32 %v1038_v57, %v1008_v1 }
 0x136   :  { %1400 = vperm.xlu0 %1633, %v2690_v61  }
 0x137   :  { %v1040_v29 = vadd.f32 %v1039_v52, %v1009_v14  ;;  %v954_v22 = vpop.permute.xlu0 %953 }
 0x138   :  { %1173 = vperm.xlu1 %1634, %v2688_v37   ;;  %v942_v6 = vpop.permute.xlu1 %941  ;;  %v1014_v55 = vmul.f32 %v954_v22, %v2364_v41 }
 0x139   :  { %v1011_v12 = vmul.f32 %v942_v6, %v2342_v4  ;;  %v1041_v3 = vadd.f32 %v1040_v29, %v1010_v13  ;;  %v2694_v13 = vld [vmem:[#allocation16_spill] sm:$0xff] }
 0x13a   :  { %1404 = vperm.xlu0 %1633, %v2691_v17  }
 0x13b   :  { %v1042_v33 = vadd.f32 %v1041_v3, %v1011_v12  ;;  %v962_v20 = vpop.permute.xlu0 %961 }
 0x13c   :  { %1177 = vperm.xlu1 %1634, %v2689_v18   ;;  %v950_v27 = vpop.permute.xlu1 %949  ;;  %v1016_v18 = vmul.f32 %v962_v20, %v2380_v21 }
 0x13d   :  { %v1013_v0 = vmul.f32 %v950_v27, %v2357_v56  ;;  %v1043_v35 = vadd.f32 %v1042_v33, %v1012_v42  ;;  %v2695_v42 = vld [vmem:[#allocation24_spill] sm:$0xff]  ;;  %v2696_v33 = vld [vmem:[#allocation37_spill] sm:$0xff] }
 0x13e   :  { %1408 = vperm.xlu0 %1633, %v2692_v50  }
 0x13f   :  { %v1044_v37 = vadd.f32 %v1043_v35, %v1013_v0  ;;  %v970_v36 = vpop.permute.xlu0 %969 }
 0x140   :  { %v1018_v49 = vmul.f32 %v970_v36, %v2390_v63  ;;  %1181 = vperm.xlu1 %1634, %v2690_v61   ;;  %v958_v59 = vpop.permute.xlu1 %957 }
 0x141   :  { %v1015_v25 = vmul.f32 %v958_v59, %v2367_v11  ;;  %v1045_v54 = vadd.f32 %v1044_v37, %v1014_v55 }
 0x142   :  { %1412 = vperm.xlu0 %1633, %v2693_v10  }
 0x143   :  { %v1046_v1 = vadd.f32 %v1045_v54, %v1015_v25  ;;  %v978_v57 = vpop.permute.xlu0 %977 }
 0x144   :  { %v1020_v39 = vmul.f32 %v978_v57, %v2404_v46  ;;  %1185 = vperm.xlu1 %1634, %v2691_v17   ;;  %v966_v48 = vpop.permute.xlu1 %965  ;;  %v564_v17 = vadd.f32 %v2374_v32, %v2696_v33 }
 0x145   :  { %v1017_v14 = vmul.f32 %v966_v48, %v2387_v24  ;;  %v1047_v52 = vadd.f32 %v1046_v1, %v1016_v18  ;;  %v2697_v48 = vld [vmem:[#allocation17_spill] sm:$0xff] }
 0x146   :  { %1416 = vperm.xlu0 %1633, %v2694_v13   ;;  %v2476_v37 = vmax.f32 %v564_v17, 0.0  ;;  %v1062_v17 = vstv %s1061_s2 }
 0x147   :  { %v1048_v61 = vadd.f32 %v1047_v52, %v1017_v14  ;;  %v986_v29 = vpop.permute.xlu0 %985 }
 0x148   :  { %v1022_v22 = vmul.f32 %v986_v29, %v2417_v45  ;;  %1189 = vperm.xlu1 %1634, %v2692_v50   ;;  %v974_v6 = vpop.permute.xlu1 %973 }
 0x149   :  { %v1019_v12 = vmul.f32 %v974_v6, %v2396_v2  ;;  %v1049_v3 = vadd.f32 %v1048_v61, %v1018_v49 }
 0x14a   :  { %1420 = vperm.xlu0 %1633, %v2695_v42  }
 0x14b   :  { %v1050_v20 = vadd.f32 %v1049_v3, %v1019_v12 }
 0x14c   :  { %1193 = vperm.xlu1 %1634, %v2693_v10   ;;  %v982_v27 = vpop.permute.xlu1 %981  ;;  %v1082_v0 = vpop.permute.xlu0 %1081 }
 0x14d   :  { %v1021_v35 = vmul.f32 %v982_v27, %v2411_v7  ;;  %v1051_v55 = vadd.f32 %v1050_v20, %v1020_v39  ;;  %v1208_v39 = vmul.f32 %v1082_v0, %v2669_v5 }
 0x14f   :  { %v1052_v50 = vadd.f32 %v1051_v55, %v1021_v35 }
 0x150   :  { %1197 = vperm.xlu1 %1634, %v2694_v13   ;;  %v990_v36 = vpop.permute.xlu1 %989  ;;  %v1094_v49 = vpop.permute.xlu0 %1093 }
 0x151   :  { %v1023_v59 = vmul.f32 %v990_v36, %v2476_v37  ;;  %v1053_v25 = vadd.f32 %v1052_v50, %v1022_v22  ;;  %v1211_v6 = vmul.f32 %v1094_v49, %v2219_v47 }
 0x153   :  { %v1054_v54 = vadd.f32 %v1053_v25, %v1023_v59 }
 0x154   :  { %1201 = vperm.xlu1 %1634, %v2695_v42   ;;  %v1102_v32 = vpop.permute.xlu0 %1101 }
 0x155   :  { %v1055_v10 = vrot.slane %v1054_v54, 4  ;;  %v1086_v18 = vpop.permute.xlu1 %1085  ;;  %v1213_v35 = vmul.f32 %v1102_v32, %v2679_v60 }
 0x156   :  { %v1209_v1 = vmul.f32 %v1086_v18, %v2211_v19 }
 0x157   :  { %v1056_v57 = vadd.f32 %v1055_v10, %v1054_v54 }
 0x158   :  { %1205 = vperm.xlu1 %1634, %v2697_v48   ;;  %v1110_v14 = vpop.permute.xlu0 %1109  ;;  %v1240_v61 = vadd.f32 %v1209_v1, %v1208_v39 }
 0x159   :  { %v1057_v52 = vrot.slane %v1056_v57, 2  ;;  %v1090_v13 = vpop.permute.xlu1 %1089  ;;  %v1215_v54 = vmul.f32 %v1110_v14, %v2246_v40 }
 0x15a   :  { %v1210_v29 = vmul.f32 %v1090_v13, %v2209_v23 }
 0x15b   :  { %v1058_v22 = vadd.f32 %v1057_v52, %v1056_v57 }
 0x15c   :  { %v1241_v12 = vadd.f32 %v1240_v61, %v1210_v29  ;;  %1635 = vset.pattern.permute.xlu1 %v2661_v26  ;;  %v1118_v3 = vpop.permute.xlu0 %1117  ;;  %v2698_v29 = vld [vmem:[#allocation36_spill] sm:$0xff] }
 0x15d   :  { %v1059_v42 = vrot.slane %v1058_v22, 1  ;;  %1424 = vperm.xlu1 %1635, %v2697_v48   ;;  %v1098_v33 = vpop.permute.xlu1 %1097  ;;  %v1217_v32 = vmul.f32 %v1118_v3, %v2685_v8 }
 0x15e   :  { %v1212_v20 = vmul.f32 %v1098_v33, %v2227_v15  ;;  %v1242_v27 = vadd.f32 %v1241_v12, %v1211_v6 }
 0x15f   :  { %v1060_v0 = vadd.f32 %v1059_v42, %v1058_v22  ;;  %v823_v22 = vmul.f32 %v2698_v29, %v2476_v37 }
 0x160   :  { %v1243_v55 = vadd.f32 %v1242_v27, %v1212_v20  ;;  %v1126_v50 = vpop.permute.xlu0 %1125 }
 0x161   :  { %v2490_v36 = vadd.f32 %v1062_v17, %v1060_v0  ;;  %v1106_v49 = vpop.permute.xlu1 %1105  ;;  %v854_v14 = vadd.f32 %v2430_v9, %v823_v22  ;;  %v1219_v42 = vmul.f32 %v1126_v50, %v2277_v31 }
 0x162   :  { %v1214_v59 = vmul.f32 %v1106_v49, %v2239_v28  ;;  %v1244_v26 = vadd.f32 %v1243_v55, %v1213_v35 }
 0x163   :  { %v1064_v25 = vmin.f32 %v2490_v36, 20.0  ;;  %v855_v0 = vrot.slane %v854_v14, 4  ;;  %vm1065_vm4 = vcmp.gt.f32.partialorder %v2490_v36, 20.0 }
 0x164   :  { %v1245_v10 = vadd.f32 %v1244_v26, %v1214_v59  ;;  %v1134_v18 = vpop.permute.xlu0 %1133 }
 0x165   :  { %v1066_v1 = vmul.f32 1.442695, %v1064_v25  ;;  %v1114_v57 = vpop.permute.xlu1 %1113  ;;  %v1221_v35 = vmul.f32 %v1134_v18, %v2303_v16  ;;  %v856_v9 = vadd.f32 %v855_v0, %v854_v14 }
 0x166   :  { %v1216_v39 = vmul.f32 %v1114_v57, %v2256_v34  ;;  %v1246_v48 = vadd.f32 %v1245_v10, %v1215_v54 }
 0x167   :  { %1654 = vpow2.f32 %v1066_v1 }
 0x168   :  { %v1247_v52 = vadd.f32 %v1246_v48, %v1216_v39  ;;  %v1142_v13 = vpop.permute.xlu0 %1141 }
 0x169   :  { %v1122_v61 = vpop.permute.xlu1 %1121  ;;  %v1223_v50 = vmul.f32 %v1142_v13, %v2310_v62 }
 0x16a   :  { %v1218_v6 = vmul.f32 %v1122_v61, %v2269_v51  ;;  %v1248_v12 = vadd.f32 %v1247_v52, %v1217_v32  ;;  %v857_v52 = vrot.slane %v856_v9, 2 }
 0x16c   :  { %v1249_v33 = vadd.f32 %v1248_v12, %v1218_v6  ;;  %v2502_v17 = vpop.permute.xlu0 %1149  ;;  %v858_v22 = vadd.f32 %v857_v52, %v856_v9 }
 0x16d   :  { %v1130_v20 = vpop.permute.xlu1 %1129 }
 0x16e   :  { %v1220_v27 = vmul.f32 %v1130_v20, %v2288_v38  ;;  %v1250_v3 = vadd.f32 %v1249_v33, %v1219_v42  ;;  %v859_v20 = vrot.slane %v858_v22, 1 }
 0x170   :  { %v1251_v55 = vadd.f32 %v1250_v3, %v1220_v27 }
 0x171   :  { %v1138_v49 = vpop.permute.xlu1 %1137  ;;  %v1305_v59 = vpop.permute.xlu0 %1304 }
 0x172   :  { %v1222_v26 = vmul.f32 %v1138_v49, %v2299_v30  ;;  %v1252_v25 = vadd.f32 %v1251_v55, %v1221_v35  ;;  %v1428_v42 = vmul.f32 %v1305_v59, %v2211_v19 }
 0x174   :  { %v1655_v54 = vpop.eup %1654  ;;  %v1253_v10 = vadd.f32 %v1252_v25, %v1222_v26 }
 0x175   :  { %v1068_v1 = vadd.f32 1.0, %v1655_v54  ;;  %v1146_v57 = vpop.permute.xlu1 %1145  ;;  %v1317_v39 = vpop.permute.xlu0 %1316  ;;  %v1071_v6 = vmul.f32 -0.5, %v1655_v54  ;;  %v1074_v35 = vand.u32 2147483647, %v1655_v54 }
 0x176   :  { %v1224_v48 = vmul.f32 %v1146_v57, %v2317_v53  ;;  %v1254_v32 = vadd.f32 %v1253_v10, %v1223_v50  ;;  %v860_v50 = vadd.f32 %v859_v20, %v858_v22  ;;  %v862_v57 = vstv %s1558_s3 }
 0x177   :  { %1656 = vlog2.f32 %v1068_v1  ;;  %v1072_v27 = vadd.f32 1.0, %v1071_v6  ;;  %vm1075_vm3 = vcmp.lt.f32.partialorder %v1074_v35, 0.0004427343 }
 0x178   :  { %v2509_v18 = vadd.f32 %v1254_v32, %v1224_v48  ;;  %v863_v6 = vadd.f32 %v862_v57, %v860_v50 }
 0x179   :  { %v1325_v61 = vpop.permute.xlu0 %1324  ;;  %v1073_v59 = vmul.f32 %v1655_v54, %v1072_v27 }
 0x17a   :  { %v1301_v29 = vpop.permute.xlu1 %1300  ;;  %v1433_v54 = vmul.f32 %v1325_v61, %v2239_v28 }
 0x17b   :  { %v1427_v12 = vmul.f32 %v1301_v29, %v2669_v5  ;;  %v1666_v5 = vld [vmem:[%s2576_s0 + $0x8] sm:$0x7]  ;;  %s1559_s0 = sld [smem:[#allocation2 + $0x1]] }
 0x17c   :  { %v2518_v9 = vunpack.c.l.bf16 %v1666_v5 }
 0x17d   :  { %v1333_v14 = vpop.permute.xlu0 %1332  ;;  %v1459_v3 = vadd.f32 %v1428_v42, %v1427_v12 }
 0x17e   :  { %v1309_v13 = vpop.permute.xlu1 %1308  ;;  %v1435_v20 = vmul.f32 %v1333_v14, %v2256_v34 }
 0x17f   :  { %v1429_v33 = vmul.f32 %v1309_v13, %v2209_v23  ;;  %v1431_v23 = vmul.f32 %v1317_v39, %v2227_v15 }
 0x181   :  { %v1341_v0 = vpop.permute.xlu0 %1340  ;;  %v1460_v49 = vadd.f32 %v1459_v3, %v1429_v33 }
 0x182   :  { %v1313_v55 = vpop.permute.xlu1 %1312 }
 0x183   :  { %v1430_v26 = vmul.f32 %v1313_v55, %v2219_v47  ;;  %v1437_v55 = vmul.f32 %v1341_v0, %v2269_v51 }
 0x184   :  { %v1657_v25 = vpop.eup %1656 }
 0x185   :  { %v1070_v19 = vmul.f32 0.6931472, %v1657_v25  ;;  %v1461_v10 = vadd.f32 %v1460_v49, %v1430_v26  ;;  %v1349_v1 = vpop.permute.xlu0 %1348 }
 0x186   :  { %v1321_v48 = vpop.permute.xlu1 %1320  ;;  %v1439_v5 = vmul.f32 %v1349_v1, %v2288_v38 }
 0x187   :  { %v1076_v47 = vsel %vm1075_vm3, %v1073_v59, %v1070_v19  ;;  %v1432_v32 = vmul.f32 %v1321_v48, %v2679_v60  ;;  %v1462_v52 = vadd.f32 %v1461_v10, %v1431_v23 }
 0x188   :  { %v1077_v29 = vsel %vm1065_vm4, %v2490_v36, %v1076_v47 }
 0x189   :  { %v1078_v22 = vmul.f32 %v1077_v29, %v2518_v9  ;;  %v1463_v12 = vadd.f32 %v1462_v52, %v1432_v32  ;;  %v1357_v15 = vpop.permute.xlu0 %1356 }
 0x18a   :  { %v1329_v39 = vpop.permute.xlu1 %1328  ;;  %v1441_v59 = vmul.f32 %v1357_v15, %v2299_v30 }
 0x18b   :  { %v2526_v13 = vadd.f32 %v1078_v22, %v863_v6  ;;  %v1434_v42 = vmul.f32 %v1329_v39, %v2246_v40  ;;  %v1464_v33 = vadd.f32 %v1463_v12, %v1433_v54 }
 0x18d   :  { %v1465_v27 = vadd.f32 %v1464_v33, %v1434_v42  ;;  %v1365_v60 = vpop.permute.xlu0 %1364 }
 0x18e   :  { %v1337_v3 = vpop.permute.xlu1 %1336  ;;  %v1443_v57 = vmul.f32 %v1365_v60, %v2317_v53 }
 0x18f   :  { %v1436_v36 = vmul.f32 %v1337_v3, %v2685_v8  ;;  %v1466_v35 = vadd.f32 %v1465_v27, %v1435_v20  ;;  %v1225_v27 = vmul.f32 %v2502_v17, %v2327_v43 }
 0x191   :  { %v1467_v49 = vadd.f32 %v1466_v35, %v1436_v36  ;;  %v1369_v28 = vpop.permute.xlu0 %1368  ;;  %v1256_v35 = vadd.f32 %v2509_v18, %v1225_v27 }
 0x192   :  { %v1345_v61 = vpop.permute.xlu1 %1344  ;;  %v1444_v38 = vmul.f32 %v1369_v28, %v2327_v43 }
 0x193   :  { %v1438_v26 = vmul.f32 %v1345_v61, %v2277_v31  ;;  %v1468_v25 = vadd.f32 %v1467_v49, %v1437_v55 }
 0x195   :  { %v1469_v40 = vadd.f32 %v1468_v25, %v1438_v26  ;;  %v1373_v50 = vpop.permute.xlu0 %1372 }
 0x196   :  { %v1353_v19 = vpop.permute.xlu1 %1352  ;;  %v1445_v32 = vmul.f32 %v1373_v50, %v2334_v58 }
 0x197   :  { %v1440_v34 = vmul.f32 %v1353_v19, %v2303_v16  ;;  %v1470_v14 = vadd.f32 %v1469_v40, %v1439_v5 }
 0x199   :  { %v1471_v8 = vadd.f32 %v1470_v14, %v1440_v34  ;;  %v1377_v23 = vpop.permute.xlu0 %1376 }
 0x19a   :  { %v1361_v10 = vpop.permute.xlu1 %1360  ;;  %v1446_v30 = vmul.f32 %v1377_v23, %v2342_v4 }
 0x19b   :  { %v1442_v51 = vmul.f32 %v1361_v10, %v2310_v62  ;;  %v1472_v0 = vadd.f32 %v1471_v8, %v1441_v59 }
 0x19d   :  { %v1473_v31 = vadd.f32 %v1472_v0, %v1442_v51  ;;  %v1381_v48 = vpop.permute.xlu0 %1380 }
 0x19e   :  { %v1447_v62 = vmul.f32 %v1381_v48, %v2349_v44 }
 0x19f   :  { %v1474_v1 = vadd.f32 %v1473_v31, %v1443_v57  ;;  %v1154_v47 = vpop.permute.xlu1 %1153 }
 0x1a0   :  { %v1226_v60 = vmul.f32 %v1154_v47, %v2334_v58 }
 0x1a1   :  { %v1475_v16 = vadd.f32 %v1474_v1, %v1444_v38  ;;  %v1385_v52 = vpop.permute.xlu0 %1384 }
 0x1a2   :  { %v1448_v39 = vmul.f32 %v1385_v52, %v2357_v56  ;;  %v1257_v26 = vadd.f32 %v1256_v35, %v1226_v60 }
 0x1a3   :  { %v1476_v29 = vadd.f32 %v1475_v16, %v1445_v32  ;;  %v1158_v6 = vpop.permute.xlu1 %1157 }
 0x1a4   :  { %v1227_v55 = vmul.f32 %v1158_v6, %v2342_v4 }
 0x1a5   :  { %v1477_v22 = vadd.f32 %v1476_v29, %v1446_v30  ;;  %v1389_v54 = vpop.permute.xlu0 %1388 }
 0x1a6   :  { %v1449_v3 = vmul.f32 %v1389_v54, %v2364_v41  ;;  %v1258_v40 = vadd.f32 %v1257_v26, %v1227_v55 }
 0x1a7   :  { %v1162_v12 = vpop.permute.xlu1 %1161  ;;  %v1478_v53 = vadd.f32 %v1477_v22, %v1447_v62 }
 0x1a8   :  { %v1228_v25 = vmul.f32 %v1162_v12, %v2349_v44 }
 0x1a9   :  { %v1393_v15 = vpop.permute.xlu0 %1392  ;;  %v1479_v33 = vadd.f32 %v1478_v53, %v1448_v39 }
 0x1aa   :  { %v1450_v28 = vmul.f32 %v1393_v15, %v2367_v11  ;;  %v1259_v19 = vadd.f32 %v1258_v40, %v1228_v25 }
 0x1ab   :  { %v1166_v42 = vpop.permute.xlu1 %1165  ;;  %v1480_v49 = vadd.f32 %v1479_v33, %v1449_v3 }
 0x1ac   :  { %v1229_v43 = vmul.f32 %v1166_v42, %v2357_v56 }
 0x1ad   :  { %v1397_v20 = vpop.permute.xlu0 %1396  ;;  %v1481_v50 = vadd.f32 %v1480_v49, %v1450_v28 }
 0x1ae   :  { %v1451_v58 = vmul.f32 %v1397_v20, %v2380_v21  ;;  %v1260_v14 = vadd.f32 %v1259_v19, %v1229_v43  ;;  %v1278_v43 = vstv %s1559_s0 }
 0x1af   :  { %v1170_v36 = vpop.permute.xlu1 %1169 }
 0x1b0   :  { %v1230_v18 = vmul.f32 %v1170_v36, %v2364_v41  ;;  %v1482_v59 = vadd.f32 %v1481_v50, %v1451_v58 }
 0x1b1   :  { %v1401_v61 = vpop.permute.xlu0 %1400 }
 0x1b2   :  { %v1452_v4 = vmul.f32 %v1401_v61, %v2387_v24  ;;  %v1261_v10 = vadd.f32 %v1260_v14, %v1230_v18 }
 0x1b3   :  { %v1174_v5 = vpop.permute.xlu1 %1173 }
 0x1b4   :  { %v1231_v8 = vmul.f32 %v1174_v5, %v2367_v11  ;;  %v1483_v51 = vadd.f32 %v1482_v59, %v1452_v4 }
 0x1b5   :  { %v1405_v17 = vpop.permute.xlu0 %1404 }
 0x1b6   :  { %v1453_v44 = vmul.f32 %v1405_v17, %v2390_v63  ;;  %v1262_v31 = vadd.f32 %v1261_v10, %v1231_v8 }
 0x1b7   :  { %v1178_v34 = vpop.permute.xlu1 %1177 }
 0x1b8   :  { %v1232_v56 = vmul.f32 %v1178_v34, %v2380_v21  ;;  %v1484_v48 = vadd.f32 %v1483_v51, %v1453_v44  ;;  %v1497_v34 = vstv %s1560_s28 }
 0x1b9   :  { %v1409_v23 = vpop.permute.xlu0 %1408 }
 0x1ba   :  { %v1454_v0 = vmul.f32 %v1409_v23, %v2396_v2  ;;  %v1263_v1 = vadd.f32 %v1262_v31, %v1232_v56 }
 0x1bb   :  { %v1182_v57 = vpop.permute.xlu1 %1181 }
 0x1bc   :  { %v1233_v41 = vmul.f32 %v1182_v57, %v2387_v24  ;;  %v1485_v47 = vadd.f32 %v1484_v48, %v1454_v0 }
 0x1bd   :  { %v1413_v38 = vpop.permute.xlu0 %1412 }
 0x1be   :  { %v1455_v32 = vmul.f32 %v1413_v38, %v2404_v46  ;;  %v1264_v16 = vadd.f32 %v1263_v1, %v1233_v41 }
 0x1bf   :  { %v1186_v11 = vpop.permute.xlu1 %1185 }
 0x1c0   :  { %v1486_v52 = vadd.f32 %v1485_v47, %v1455_v32  ;;  %v1234_v30 = vmul.f32 %v1186_v11, %v2390_v63 }
 0x1c1   :  { %v1417_v29 = vpop.permute.xlu0 %1416 }
 0x1c2   :  { %v1265_v6 = vadd.f32 %v1264_v16, %v1234_v30  ;;  %v1456_v21 = vmul.f32 %v1417_v29, %v2411_v7 }
 0x1c3   :  { %v1190_v22 = vpop.permute.xlu1 %1189 }
 0x1c4   :  { %v1235_v54 = vmul.f32 %v1190_v22, %v2396_v2  ;;  %v1487_v12 = vadd.f32 %v1486_v52, %v1456_v21 }
 0x1c5   :  { %v1421_v62 = vpop.permute.xlu0 %1420 }
 0x1c6   :  { %v1457_v24 = vmul.f32 %v1421_v62, %v2417_v45  ;;  %v1266_v15 = vadd.f32 %v1265_v6, %v1235_v54 }
 0x1c7   :  { %v1194_v53 = vpop.permute.xlu1 %1193 }
 0x1c8   :  { %v1488_v39 = vadd.f32 %v1487_v12, %v1457_v24  ;;  %v1236_v42 = vmul.f32 %v1194_v53, %v2404_v46 }
 0x1ca   :  { %v1267_v33 = vadd.f32 %v1266_v15, %v1236_v42 }
 0x1cb   :  { %v1198_v20 = vpop.permute.xlu1 %1197 }
 0x1cc   :  { %v1237_v63 = vmul.f32 %v1198_v20, %v2411_v7 }
 0x1ce   :  { %v1268_v60 = vadd.f32 %v1267_v33, %v1237_v63 }
 0x1cf   :  { %v1202_v27 = vpop.permute.xlu1 %1201 }
 0x1d0   :  { %v1238_v3 = vmul.f32 %v1202_v27, %v2417_v45 }
 0x1d2   :  { %v1269_v36 = vadd.f32 %v1268_v60, %v1238_v3 }
 0x1d3   :  { %v1206_v35 = vpop.permute.xlu1 %1205 }
 0x1d4   :  { %v1239_v2 = vmul.f32 %v1206_v35, %v2476_v37 }
 0x1d6   :  { %v1270_v55 = vadd.f32 %v1269_v36, %v1239_v2 }
 0x1d8   :  { %v1271_v49 = vrot.slane %v1270_v55, 4  ;;  %v1425_v28 = vpop.permute.xlu1 %1424 }
 0x1d9   :  { %v1458_v61 = vmul.f32 %v1425_v28, %v2476_v37 }
 0x1da   :  { %v1272_v26 = vadd.f32 %v1271_v49, %v1270_v55 }
 0x1db   :  { %v1489_v46 = vadd.f32 %v1488_v39, %v1458_v61 }
 0x1dc   :  { %v1273_v25 = vrot.slane %v1272_v26, 2 }
 0x1dd   :  { %v1490_v5 = vrot.slane %v1489_v46, 4 }
 0x1de   :  { %v1274_v40 = vadd.f32 %v1273_v25, %v1272_v26 }
 0x1df   :  { %v1491_v7 = vadd.f32 %v1490_v5, %v1489_v46 }
 0x1e0   :  { %v1275_v50 = vrot.slane %v1274_v40, 1 }
 0x1e1   :  { %v1492_v45 = vrot.slane %v1491_v7, 2 }
 0x1e2   :  { %v1276_v58 = vadd.f32 %v1275_v50, %v1274_v40 }
 0x1e3   :  { %v1493_v17 = vadd.f32 %v1492_v45, %v1491_v7 }
 0x1e4   :  { %v1279_v19 = vadd.f32 %v1278_v43, %v1276_v58 }
 0x1e5   :  { %v1494_v18 = vrot.slane %v1493_v17, 1 }
 0x1e6   :  { %v1280_v4 = vmin.f32 %v1279_v19, 20.0  ;;  %vm1281_vm6 = vcmp.gt.f32.partialorder %v1279_v19, 20.0 }
 0x1e7   :  { %v1495_v14 = vadd.f32 %v1494_v18, %v1493_v17 }
 0x1e8   :  { %v1282_v59 = vmul.f32 1.442695, %v1280_v4 }
 0x1e9   :  { %v1498_v8 = vadd.f32 %v1497_v34, %v1495_v14 }
 0x1ea   :  { %1658 = vpow2.f32 %v1282_v59 }
 0x1eb   :  { %v1499_v37 = vmin.f32 %v1498_v8, 20.0  ;;  %vm1500_vm8 = vcmp.gt.f32.partialorder %v1498_v8, 20.0 }
 0x1ed   :  { %v1501_v44 = vmul.f32 1.442695, %v1499_v37 }
 0x1ef   :  { %1660 = vpow2.f32 %v1501_v44 }
 0x1f7   :  { %v1659_v23 = vpop.eup %1658 }
 0x1f8   :  { %v1284_v10 = vadd.f32 1.0, %v1659_v23  ;;  %v1287_v0 = vmul.f32 -0.5, %v1659_v23  ;;  %v1290_v31 = vand.u32 2147483647, %v1659_v23 }
 0x1fa   :  { %1662 = vlog2.f32 %v1284_v10  ;;  %v1288_v57 = vadd.f32 1.0, %v1287_v0  ;;  %vm1291_vm5 = vcmp.lt.f32.partialorder %v1290_v31, 0.0004427343 }
 0x1fc   :  { %v1661_v51 = vpop.eup %1660  ;;  %v1289_v1 = vmul.f32 %v1659_v23, %v1288_v57 }
 0x1fd   :  { %v1503_v56 = vadd.f32 1.0, %v1661_v51  ;;  %v1506_v48 = vmul.f32 -0.5, %v1661_v51  ;;  %v1509_v11 = vand.u32 2147483647, %v1661_v51 }
 0x1ff   :  { %1664 = vlog2.f32 %v1503_v56  ;;  %v1507_v47 = vadd.f32 1.0, %v1506_v48  ;;  %vm1510_vm7 = vcmp.lt.f32.partialorder %v1509_v11, 0.0004427343 }
 0x201   :  { %v1508_v6 = vmul.f32 %v1661_v51, %v1507_v47 }
 0x207   :  { %v1663_v41 = vpop.eup %1662 }
 0x208   :  { %v1286_v38 = vmul.f32 0.6931472, %v1663_v41 }
 0x20a   :  { %v1292_v32 = vsel %vm1291_vm5, %v1289_v1, %v1286_v38 }
 0x20b   :  { %v1293_v16 = vsel %vm1281_vm6, %v1279_v19, %v1292_v32 }
 0x20c   :  { %v1665_v52 = vpop.eup %1664  ;;  %v1294_v30 = vmul.f32 %v1293_v16, %v2518_v9 }
 0x20d   :  { %v1505_v29 = vmul.f32 0.6931472, %v1665_v52 }
 0x20e   :  { %v1296_v21 = vrot.slane %v1294_v30, 1 }
 0x20f   :  { %v1511_v22 = vsel %vm1510_vm7, %v1508_v6, %v1505_v29 }
 0x210   :  { %v1298_v54 = vadd.f32 %v1296_v21, %v2526_v13  ;;  %v1512_v62 = vsel %vm1500_vm8, %v1498_v8, %v1511_v22 }
 0x211   :  { %v1513_v12 = vmul.f32 %v1512_v62, %v2518_v9 }
 0x213   :  { %v1515_v24 = vrot.slane %v1513_v12, 2 }
 0x215   :  { %v1517_v53 = vadd.f32 %v1515_v24, %v1298_v54 }
 0x217   :  { %1518 = vst [vmem:[%s2581_s5 - $0x2] sm:$0x4] %v1517_v53 }
 0x218   :  { %1523 = vsyncpa [#allocation3], 1 }

</bundles_post_ra>
